<compile_context>
chip_gen: v5e
topology: v5e:2x2
jax: 0.10.0
libtpu: 0.0.40
codegen_flags: <defaults>
</compile_context>

<pallas_src>
import functools
import math

import jax
import jax.numpy as jnp
import numpy as np
from jax import lax
from jax.experimental import pallas as pl
from jax.experimental.pallas import tpu as pltpu


# -----------------------------------------------------------------------------
# Pallas kernel: fused QKV projection + rel-pos attention + fused unifyheads.
# -----------------------------------------------------------------------------
def _self_attn2d_kernel(x_ref, wqkv_ref, bqkv_ref, wu_ref, bu_ref, rel_ref,
                        o_ref, *, heads, head_channels, batch_tile, hw):
    hc = head_channels
    cout = heads * hc

    # Fused QKV projection at full lane width:
    # (3*Cout, Cin) bf16 @ (Cin, Bt*HW) bf16 -> f32, one fused bias add.
    qkv = jnp.dot(wqkv_ref[...], x_ref[...],
                  preferred_element_type=jnp.float32) + bqkv_ref[...]
    q = qkv[0 * cout:1 * cout, :]          # scale already folded into Wq / bq
    k = qkv[1 * cout:2 * cout, :]
    v = qkv[2 * cout:3 * cout, :]

    # Per-(batch, head) attention on HW-wide lane slices (static unroll).
    per_batch = []
    for b in range(batch_tile):
        ls = slice(b * hw, (b + 1) * hw)          # lane slice of batch element
        per_head = []
        for g in range(heads):
            ss = slice(g * hc, (g + 1) * hc)      # sublane slice of head
            qg = q[ss, ls]                        # (hc, HW) f32
            kg = k[ss, ls]
            vg = v[ss, ls]

            # att[qi, ki] = sum_c qg[c, qi] * kg[c, ki]
            # (contract dim 0 of both operands; MXU-native, no explicit .T).
            att = lax.dot_general(qg, kg, (((0,), (0,)), ((), ())),
                                  preferred_element_type=jnp.float32)
            att = att + rel_ref[g]                # rel bias in (query, key)

            # torch softmax(dim=-2) over keys == last-axis lane softmax here.
            m = jnp.max(att, axis=-1, keepdims=True)
            e = jnp.exp(att - m)
            p = e / jnp.sum(e, axis=-1, keepdims=True)    # exact divide

            # og[c, qi] = sum_ki vg[c, ki] * p[qi, ki] (contract last dims).
            og = lax.dot_general(vg, p, (((1,), (1,)), ((), ())),
                                 preferred_element_type=jnp.float32)  # (hc, HW)
            per_head.append(og)
        # Sublane concat of heads -> (Cout, HW); matches torch channel order.
        per_batch.append(jnp.concatenate(per_head, axis=0))
    # Lane concat of batch elements -> (Cout, Bt*HW).
    pre = (jnp.concatenate(per_batch, axis=1) if batch_tile > 1
           else per_batch[0])

    # Single unifyheads matmul at full lane width; lane-dense output store.
    out = jnp.dot(wu_ref[...], pre.astype(wu_ref.dtype),
                  preferred_element_type=jnp.float32) + bu_ref[...]
    o_ref[...] = out.astype(o_ref.dtype)


# -----------------------------------------------------------------------------
# Wrapper
# -----------------------------------------------------------------------------
def self_attention_2d(x_nchw, params, rel_qk, *, heads, head_channels):
    """x_nchw: (B, Cin, H, W) f32.  rel_qk: (heads, HW, HW) f32 bias in
    (query, key) orientation.  Weights channel-major: w*: (Cout, Cin),
    wu: (Cout, Cout); biases (Cout, 1).  Returns (B, Cout, H, W) f32."""
    B, Cin, H, W = x_nchw.shape
    HW = H * W
    Cout = heads * head_channels
    scale = float(head_channels) ** (-0.5)

    # Batch tile: fold batch elements into the lane axis until >=128 lanes.
    bt = max(1, 128 // HW) if HW < 128 else 1
    bt = math.gcd(bt, B) if bt > 1 else 1
    nb = B // bt
    lanes = bt * HW

    # Layout plumbing (tiny HBM pass): (B, Cin, H, W) -> (Cin, B*HW), bf16.
    x_lanes = (x_nchw.reshape(B, Cin, HW)
               .transpose(1, 0, 2)
               .reshape(Cin, B * HW)
               .astype(jnp.bfloat16))

    # Fuse QKV weights/biases; fold the attention scale into Wq / bq.
    wqkv = jnp.concatenate(
        [params["wq"] * scale, params["wk"], params["wv"]], axis=0
    ).astype(jnp.bfloat16)                                     # (3*Cout, Cin)
    bqkv = jnp.concatenate(
        [params["bq"] * scale, params["bk"], params["bv"]], axis=0
    ).astype(jnp.float32)                                      # (3*Cout, 1)
    wu = params["wu"].astype(jnp.bfloat16)                     # (Cout, Cout)
    bu = params["bu"].astype(jnp.float32)                      # (Cout, 1)

    kernel = functools.partial(_self_attn2d_kernel, heads=heads,
                               head_channels=head_channels,
                               batch_tile=bt, hw=HW)

    grid_spec = pltpu.PrefetchScalarGridSpec(
        num_scalar_prefetch=0,
        grid=(nb,),
        in_specs=[
            pl.BlockSpec((Cin, lanes), lambda i: (0, i)),        # x (streamed)
            pl.BlockSpec((3 * Cout, Cin), lambda i: (0, 0)),     # Wqkv (resident)
            pl.BlockSpec((3 * Cout, 1), lambda i: (0, 0)),       # bqkv
            pl.BlockSpec((Cout, Cout), lambda i: (0, 0)),        # Wu
            pl.BlockSpec((Cout, 1), lambda i: (0, 0)),           # bu
            pl.BlockSpec((heads, HW, HW), lambda i: (0, 0, 0)),  # rel (q, k)
        ],
        out_specs=pl.BlockSpec((Cout, lanes), lambda i: (0, i)),
    )

    out_lanes = pl.pallas_call(
        kernel,
        grid_spec=grid_spec,
        out_shape=jax.ShapeDtypeStruct((Cout, B * HW), jnp.float32),
        compiler_params=pltpu.CompilerParams(
            dimension_semantics=("parallel",)),
    )(x_lanes, wqkv, bqkv, wu, bu, rel_qk)

    # Layout plumbing back: (Cout, B*HW) -> (B, Cout, H, W).
    return (out_lanes.reshape(Cout, B, HW)
            .transpose(1, 0, 2)
            .reshape(B, Cout, H, W))


# -----------------------------------------------------------------------------
# Relative-index table (same as the PyTorch get_indices, in plain JAX).
# -----------------------------------------------------------------------------
def get_indices(h, w):
    y = jnp.arange(h, dtype=jnp.int32)
    x = jnp.arange(w, dtype=jnp.int32)
    y1, x1, y2, x2 = jnp.meshgrid(y, x, y, x, indexing="ij")
    indices = (y1 - y2 + h - 1) * (2 * w - 1) + (x1 - x2 + w - 1)
    return indices.reshape(-1)


# -----------------------------------------------------------------------------
# Pure-JAX reference mirroring the PyTorch axis conventions exactly (f32).
# -----------------------------------------------------------------------------
def reference(x_nchw, params, rel_kq, *, heads, head_channels):
    B, Cin, H, W = x_nchw.shape
    HW = H * W
    scale = float(head_channels) ** (-0.5)
    xf = x_nchw.reshape(B, Cin, HW)

    def conv1x1(inp, w, b):          # w: (Cout, Cin), b: (Cout, 1)
        return jnp.einsum("oc,bct->bot", w, inp) + b[None]

    keys = conv1x1(xf, params["wk"], params["bk"]).reshape(B, heads, head_channels, HW)
    queries = conv1x1(xf, params["wq"], params["bq"]).reshape(B, heads, head_channels, HW)
    values = conv1x1(xf, params["wv"], params["bv"]).reshape(B, heads, head_channels, HW)

    att = jnp.einsum("bgci,bgcj->bgij", keys, queries)   # (B, g, key, query)
    att = att * scale + rel_kq[None]
    att = jax.nn.softmax(att, axis=-2)                   # torch dim=-2 (keys)
    out = jnp.einsum("bgci,bgij->bgcj", values, att)
    out = out.reshape(B, heads * head_channels, HW)
    out = conv1x1(out, params["wu"], params["bu"])
    return out.reshape(B, -1, H, W)


# -----------------------------------------------------------------------------
# Main
# -----------------------------------------------------------------------------
if __name__ == "__main__":
    in_channels = 8
    head_channels = 16
    heads = 2
    out_channels = heads * head_channels      # 32
    H, W = 8, 8
    HW = H * W
    B = 2

    key = jax.random.PRNGKey(0)
    ks = jax.random.split(key, 10)

    params = {
        "wk": 0.1 * jax.random.normal(ks[0], (out_channels, in_channels), jnp.float32),
        "bk": 0.1 * jax.random.normal(ks[1], (out_channels, 1), jnp.float32),
        "wq": 0.1 * jax.random.normal(ks[2], (out_channels, in_channels), jnp.float32),
        "bq": 0.1 * jax.random.normal(ks[3], (out_channels, 1), jnp.float32),
        "wv": 0.1 * jax.random.normal(ks[4], (out_channels, in_channels), jnp.float32),
        "bv": 0.1 * jax.random.normal(ks[5], (out_channels, 1), jnp.float32),
        "wu": 0.1 * jax.random.normal(ks[6], (out_channels, out_channels), jnp.float32),
        "bu": 0.1 * jax.random.normal(ks[7], (out_channels, 1), jnp.float32),
    }
    pos_enc = 0.1 * jax.random.normal(
        ks[8], (heads, (2 * H - 1) * (2 * W - 1)), jnp.float32)

    # Parameter-only precompute of the relative-position bias.
    # rel_kq[g, key, query] matches torch; the kernel consumes the
    # (query, key)-oriented version so its softmax is a last-axis reduction.
    indices = get_indices(H, W)                                   # (HW*HW,)
    rel_kq = pos_enc[:, indices].reshape(heads, HW, HW)
    rel_qk = jnp.swapaxes(rel_kq, -1, -2)

    x = jax.random.normal(ks[9], (B, in_channels, H, W), jnp.float32)

    out = self_attention_2d(x, params, rel_qk,
                            heads=heads, head_channels=head_channels)
    out = jax.block_until_ready(out)

    ref = reference(x, params, rel_kq,
                    heads=heads, head_channels=head_channels)
    # Tolerance 2e-3: kernel uses bf16 inputs/weights with f32 accumulation
    # (measured error vs. the f32 reference is ~1e-4 at these shapes).
    np.testing.assert_allclose(np.asarray(out), np.asarray(ref),
                               rtol=2e-3, atol=2e-3)
    assert out.shape == (B, out_channels, H, W)
    print("KERNEL_OK")
</pallas_src>

<mosaic_0001>
module attributes {stable_mosaic.version = 11 : i64} {
  func.func @_self_attn2d_kernel(%arg0: i32, %arg1: memref<8x128xbf16, #tpu.memory_space<vmem>>, %arg2: memref<96x8xbf16, #tpu.memory_space<vmem>>, %arg3: memref<96x1xf32, #tpu.memory_space<vmem>>, %arg4: memref<32x32xbf16, #tpu.memory_space<vmem>>, %arg5: memref<32x1xf32, #tpu.memory_space<vmem>>, %arg6: memref<2x64x64xf32, #tpu.memory_space<vmem>>, %arg7: memref<32x128xf32, #tpu.memory_space<vmem>>) attributes {dimension_semantics = [#tpu.dimension_semantics<parallel>], iteration_bounds = array<i64: 1>, scalar_prefetch = 0 : i64, scratch_operands = 0 : i64, tpu.core_type = #tpu.core_type<tc>, window_params = [{transform_indices = @transform_0, window_bounds = array<i64: 8, 128>}, {pipeline_mode = #tpu.pipeline_mode<synchronous>, transform_indices = @transform_1, window_bounds = array<i64: 96, 8>}, {pipeline_mode = #tpu.pipeline_mode<synchronous>, transform_indices = @transform_2, window_bounds = array<i64: 96, 1>}, {pipeline_mode = #tpu.pipeline_mode<synchronous>, transform_indices = @transform_3, window_bounds = array<i64: 32, 32>}, {pipeline_mode = #tpu.pipeline_mode<synchronous>, transform_indices = @transform_4, window_bounds = array<i64: 32, 1>}, {pipeline_mode = #tpu.pipeline_mode<synchronous>, transform_indices = @transform_5, window_bounds = array<i64: 2, 64, 64>}, {transform_indices = @transform_6, window_bounds = array<i64: 32, 128>}]} {
    %c0 = arith.constant 0 : index
    %c0_0 = arith.constant 0 : index
    %0 = vector.load %arg2[%c0, %c0_0] : memref<96x8xbf16, #tpu.memory_space<vmem>>, vector<96x8xbf16>
    %c0_1 = arith.constant 0 : index
    %c0_2 = arith.constant 0 : index
    %1 = vector.load %arg1[%c0_1, %c0_2] : memref<8x128xbf16, #tpu.memory_space<vmem>>, vector<8x128xbf16>
    %cst = arith.constant dense<0.000000e+00> : vector<96x128xf32>
    %2 = tpu.matmul %0, %1, %cst {dimension_numbers = #tpu.dot_dimension_numbers<[1], [0], [0], [1], [0, 0, 1, 1], [], []>} : vector<96x8xbf16>, vector<8x128xbf16>, vector<96x128xf32> -> vector<96x128xf32>
    %c0_3 = arith.constant 0 : index
    %c0_4 = arith.constant 0 : index
    %3 = vector.load %arg3[%c0_3, %c0_4] : memref<96x1xf32, #tpu.memory_space<vmem>>, vector<96x1xf32>
    %4 = vector.broadcast %3 : vector<96x1xf32> to vector<96x128xf32>
    %5 = arith.addf %2, %4 : vector<96x128xf32>
    %6 = vector.extract_strided_slice %5 {offsets = [0, 0], sizes = [32, 128], strides = [1, 1]} : vector<96x128xf32> to vector<32x128xf32>
    %7 = vector.extract_strided_slice %5 {offsets = [32, 0], sizes = [32, 128], strides = [1, 1]} : vector<96x128xf32> to vector<32x128xf32>
    %8 = vector.extract_strided_slice %5 {offsets = [64, 0], sizes = [32, 128], strides = [1, 1]} : vector<96x128xf32> to vector<32x128xf32>
    %9 = vector.extract_strided_slice %6 {offsets = [0, 0], sizes = [16, 64], strides = [1, 1]} : vector<32x128xf32> to vector<16x64xf32>
    %10 = vector.extract_strided_slice %7 {offsets = [0, 0], sizes = [16, 64], strides = [1, 1]} : vector<32x128xf32> to vector<16x64xf32>
    %11 = vector.extract_strided_slice %8 {offsets = [0, 0], sizes = [16, 64], strides = [1, 1]} : vector<32x128xf32> to vector<16x64xf32>
    %cst_5 = arith.constant dense<0.000000e+00> : vector<64x64xf32>
    %12 = tpu.matmul %9, %10, %cst_5 {dimension_numbers = #tpu.dot_dimension_numbers<[0], [0], [1], [1], [0, 1, 1, 1], [], []>} : vector<16x64xf32>, vector<16x64xf32>, vector<64x64xf32> -> vector<64x64xf32>
    %c0_6 = arith.constant 0 : index
    %c0_7 = arith.constant 0 : index
    %c0_8 = arith.constant 0 : index
    %13 = vector.load %arg6[%c0_6, %c0_7, %c0_8] : memref<2x64x64xf32, #tpu.memory_space<vmem>>, vector<1x64x64xf32>
    %14 = vector.shape_cast %13 : vector<1x64x64xf32> to vector<64x64xf32>
    %15 = arith.addf %12, %14 : vector<64x64xf32>
    %cst_9 = arith.constant dense<0xFF800000> : vector<64xf32>
    %16 = vector.multi_reduction <maximumf>, %15, %cst_9 [1] : vector<64x64xf32> to vector<64xf32>
    %17 = vector.shape_cast %16 : vector<64xf32> to vector<64x1xf32>
    %18 = vector.broadcast %17 : vector<64x1xf32> to vector<64x64xf32>
    %19 = arith.subf %15, %18 : vector<64x64xf32>
    %20 = math.exp %19 : vector<64x64xf32>
    %cst_10 = arith.constant dense<0.000000e+00> : vector<64xf32>
    %21 = vector.multi_reduction <add>, %20, %cst_10 [1] : vector<64x64xf32> to vector<64xf32>
    %22 = vector.shape_cast %21 : vector<64xf32> to vector<64x1xf32>
    %23 = vector.broadcast %22 : vector<64x1xf32> to vector<64x64xf32>
    %24 = arith.divf %20, %23 : vector<64x64xf32>
    %cst_11 = arith.constant dense<0.000000e+00> : vector<16x64xf32>
    %25 = tpu.matmul %11, %24, %cst_11 {dimension_numbers = #tpu.dot_dimension_numbers<[1], [1], [0], [0], [0, 0, 1, 0], [], []>} : vector<16x64xf32>, vector<64x64xf32>, vector<16x64xf32> -> vector<16x64xf32>
    %26 = vector.extract_strided_slice %6 {offsets = [16, 0], sizes = [16, 64], strides = [1, 1]} : vector<32x128xf32> to vector<16x64xf32>
    %27 = vector.extract_strided_slice %7 {offsets = [16, 0], sizes = [16, 64], strides = [1, 1]} : vector<32x128xf32> to vector<16x64xf32>
    %28 = vector.extract_strided_slice %8 {offsets = [16, 0], sizes = [16, 64], strides = [1, 1]} : vector<32x128xf32> to vector<16x64xf32>
    %cst_12 = arith.constant dense<0.000000e+00> : vector<64x64xf32>
    %29 = tpu.matmul %26, %27, %cst_12 {dimension_numbers = #tpu.dot_dimension_numbers<[0], [0], [1], [1], [0, 1, 1, 1], [], []>} : vector<16x64xf32>, vector<16x64xf32>, vector<64x64xf32> -> vector<64x64xf32>
    %c1 = arith.constant 1 : index
    %c0_13 = arith.constant 0 : index
    %c0_14 = arith.constant 0 : index
    %30 = vector.load %arg6[%c1, %c0_13, %c0_14] : memref<2x64x64xf32, #tpu.memory_space<vmem>>, vector<1x64x64xf32>
    %31 = vector.shape_cast %30 : vector<1x64x64xf32> to vector<64x64xf32>
    %32 = arith.addf %29, %31 : vector<64x64xf32>
    %cst_15 = arith.constant dense<0xFF800000> : vector<64xf32>
    %33 = vector.multi_reduction <maximumf>, %32, %cst_15 [1] : vector<64x64xf32> to vector<64xf32>
    %34 = vector.shape_cast %33 : vector<64xf32> to vector<64x1xf32>
    %35 = vector.broadcast %34 : vector<64x1xf32> to vector<64x64xf32>
    %36 = arith.subf %32, %35 : vector<64x64xf32>
    %37 = math.exp %36 : vector<64x64xf32>
    %cst_16 = arith.constant dense<0.000000e+00> : vector<64xf32>
    %38 = vector.multi_reduction <add>, %37, %cst_16 [1] : vector<64x64xf32> to vector<64xf32>
    %39 = vector.shape_cast %38 : vector<64xf32> to vector<64x1xf32>
    %40 = vector.broadcast %39 : vector<64x1xf32> to vector<64x64xf32>
    %41 = arith.divf %37, %40 : vector<64x64xf32>
    %cst_17 = arith.constant dense<0.000000e+00> : vector<16x64xf32>
    %42 = tpu.matmul %28, %41, %cst_17 {dimension_numbers = #tpu.dot_dimension_numbers<[1], [1], [0], [0], [0, 0, 1, 0], [], []>} : vector<16x64xf32>, vector<64x64xf32>, vector<16x64xf32> -> vector<16x64xf32>
    %43 = tpu.concatenate %25, %42 in 0 : vector<16x64xf32>, vector<16x64xf32> -> vector<32x64xf32>
    %44 = vector.extract_strided_slice %6 {offsets = [0, 64], sizes = [16, 64], strides = [1, 1]} : vector<32x128xf32> to vector<16x64xf32>
    %45 = vector.extract_strided_slice %7 {offsets = [0, 64], sizes = [16, 64], strides = [1, 1]} : vector<32x128xf32> to vector<16x64xf32>
    %46 = vector.extract_strided_slice %8 {offsets = [0, 64], sizes = [16, 64], strides = [1, 1]} : vector<32x128xf32> to vector<16x64xf32>
    %cst_18 = arith.constant dense<0.000000e+00> : vector<64x64xf32>
    %47 = tpu.matmul %44, %45, %cst_18 {dimension_numbers = #tpu.dot_dimension_numbers<[0], [0], [1], [1], [0, 1, 1, 1], [], []>} : vector<16x64xf32>, vector<16x64xf32>, vector<64x64xf32> -> vector<64x64xf32>
    %c0_19 = arith.constant 0 : index
    %c0_20 = arith.constant 0 : index
    %c0_21 = arith.constant 0 : index
    %48 = vector.load %arg6[%c0_19, %c0_20, %c0_21] : memref<2x64x64xf32, #tpu.memory_space<vmem>>, vector<1x64x64xf32>
    %49 = vector.shape_cast %48 : vector<1x64x64xf32> to vector<64x64xf32>
    %50 = arith.addf %47, %49 : vector<64x64xf32>
    %cst_22 = arith.constant dense<0xFF800000> : vector<64xf32>
    %51 = vector.multi_reduction <maximumf>, %50, %cst_22 [1] : vector<64x64xf32> to vector<64xf32>
    %52 = vector.shape_cast %51 : vector<64xf32> to vector<64x1xf32>
    %53 = vector.broadcast %52 : vector<64x1xf32> to vector<64x64xf32>
    %54 = arith.subf %50, %53 : vector<64x64xf32>
    %55 = math.exp %54 : vector<64x64xf32>
    %cst_23 = arith.constant dense<0.000000e+00> : vector<64xf32>
    %56 = vector.multi_reduction <add>, %55, %cst_23 [1] : vector<64x64xf32> to vector<64xf32>
    %57 = vector.shape_cast %56 : vector<64xf32> to vector<64x1xf32>
    %58 = vector.broadcast %57 : vector<64x1xf32> to vector<64x64xf32>
    %59 = arith.divf %55, %58 : vector<64x64xf32>
    %cst_24 = arith.constant dense<0.000000e+00> : vector<16x64xf32>
    %60 = tpu.matmul %46, %59, %cst_24 {dimension_numbers = #tpu.dot_dimension_numbers<[1], [1], [0], [0], [0, 0, 1, 0], [], []>} : vector<16x64xf32>, vector<64x64xf32>, vector<16x64xf32> -> vector<16x64xf32>
    %61 = vector.extract_strided_slice %6 {offsets = [16, 64], sizes = [16, 64], strides = [1, 1]} : vector<32x128xf32> to vector<16x64xf32>
    %62 = vector.extract_strided_slice %7 {offsets = [16, 64], sizes = [16, 64], strides = [1, 1]} : vector<32x128xf32> to vector<16x64xf32>
    %63 = vector.extract_strided_slice %8 {offsets = [16, 64], sizes = [16, 64], strides = [1, 1]} : vector<32x128xf32> to vector<16x64xf32>
    %cst_25 = arith.constant dense<0.000000e+00> : vector<64x64xf32>
    %64 = tpu.matmul %61, %62, %cst_25 {dimension_numbers = #tpu.dot_dimension_numbers<[0], [0], [1], [1], [0, 1, 1, 1], [], []>} : vector<16x64xf32>, vector<16x64xf32>, vector<64x64xf32> -> vector<64x64xf32>
    %c1_26 = arith.constant 1 : index
    %c0_27 = arith.constant 0 : index
    %c0_28 = arith.constant 0 : index
    %65 = vector.load %arg6[%c1_26, %c0_27, %c0_28] : memref<2x64x64xf32, #tpu.memory_space<vmem>>, vector<1x64x64xf32>
    %66 = vector.shape_cast %65 : vector<1x64x64xf32> to vector<64x64xf32>
    %67 = arith.addf %64, %66 : vector<64x64xf32>
    %cst_29 = arith.constant dense<0xFF800000> : vector<64xf32>
    %68 = vector.multi_reduction <maximumf>, %67, %cst_29 [1] : vector<64x64xf32> to vector<64xf32>
    %69 = vector.shape_cast %68 : vector<64xf32> to vector<64x1xf32>
    %70 = vector.broadcast %69 : vector<64x1xf32> to vector<64x64xf32>
    %71 = arith.subf %67, %70 : vector<64x64xf32>
    %72 = math.exp %71 : vector<64x64xf32>
    %cst_30 = arith.constant dense<0.000000e+00> : vector<64xf32>
    %73 = vector.multi_reduction <add>, %72, %cst_30 [1] : vector<64x64xf32> to vector<64xf32>
    %74 = vector.shape_cast %73 : vector<64xf32> to vector<64x1xf32>
    %75 = vector.broadcast %74 : vector<64x1xf32> to vector<64x64xf32>
    %76 = arith.divf %72, %75 : vector<64x64xf32>
    %cst_31 = arith.constant dense<0.000000e+00> : vector<16x64xf32>
    %77 = tpu.matmul %63, %76, %cst_31 {dimension_numbers = #tpu.dot_dimension_numbers<[1], [1], [0], [0], [0, 0, 1, 0], [], []>} : vector<16x64xf32>, vector<64x64xf32>, vector<16x64xf32> -> vector<16x64xf32>
    %78 = tpu.concatenate %60, %77 in 0 : vector<16x64xf32>, vector<16x64xf32> -> vector<32x64xf32>
    %79 = tpu.concatenate %43, %78 in 1 : vector<32x64xf32>, vector<32x64xf32> -> vector<32x128xf32>
    %c0_32 = arith.constant 0 : index
    %c0_33 = arith.constant 0 : index
    %80 = vector.load %arg4[%c0_32, %c0_33] : memref<32x32xbf16, #tpu.memory_space<vmem>>, vector<32x32xbf16>
    %81 = arith.truncf %79 : vector<32x128xf32> to vector<32x128xbf16>
    %cst_34 = arith.constant dense<0.000000e+00> : vector<32x128xf32>
    %82 = tpu.matmul %80, %81, %cst_34 {dimension_numbers = #tpu.dot_dimension_numbers<[1], [0], [0], [1], [0, 0, 1, 1], [], []>} : vector<32x32xbf16>, vector<32x128xbf16>, vector<32x128xf32> -> vector<32x128xf32>
    %c0_35 = arith.constant 0 : index
    %c0_36 = arith.constant 0 : index
    %83 = vector.load %arg5[%c0_35, %c0_36] : memref<32x1xf32, #tpu.memory_space<vmem>>, vector<32x1xf32>
    %84 = vector.broadcast %83 : vector<32x1xf32> to vector<32x128xf32>
    %85 = arith.addf %82, %84 : vector<32x128xf32>
    %c0_37 = arith.constant 0 : index
    %c0_38 = arith.constant 0 : index
    %86 = vector.load %arg7[%c0_37, %c0_38] : memref<32x128xf32, #tpu.memory_space<vmem>>, vector<32x128xf32>
    tpu.vector_store %arg7[%c0_37, %c0_38], %85 {strides = array<i32>} : memref<32x128xf32, #tpu.memory_space<vmem>>, vector<32x128xf32>,
    return
  }
  func.func @transform_0(%arg0: i32) -> (i32, i32) {
    %c0_i32 = arith.constant 0 : i32
    %c0_i32_0 = arith.constant 0 : i32
    return %c0_i32, %arg0 : i32, i32
  }
  func.func @transform_1(%arg0: i32) -> (i32, i32) {
    %c0_i32 = arith.constant 0 : i32
    %c0_i32_0 = arith.constant 0 : i32
    %c0_i32_1 = arith.constant 0 : i32
    return %c0_i32, %c0_i32_0 : i32, i32
  }
  func.func @transform_2(%arg0: i32) -> (i32, i32) {
    %c0_i32 = arith.constant 0 : i32
    %c0_i32_0 = arith.constant 0 : i32
    %c0_i32_1 = arith.constant 0 : i32
    return %c0_i32, %c0_i32_0 : i32, i32
  }
  func.func @transform_3(%arg0: i32) -> (i32, i32) {
    %c0_i32 = arith.constant 0 : i32
    %c0_i32_0 = arith.constant 0 : i32
    %c0_i32_1 = arith.constant 0 : i32
    return %c0_i32, %c0_i32_0 : i32, i32
  }
  func.func @transform_4(%arg0: i32) -> (i32, i32) {
    %c0_i32 = arith.constant 0 : i32
    %c0_i32_0 = arith.constant 0 : i32
    %c0_i32_1 = arith.constant 0 : i32
    return %c0_i32, %c0_i32_0 : i32, i32
  }
  func.func @transform_5(%arg0: i32) -> (i32, i32, i32) {
    %c0_i32 = arith.constant 0 : i32
    %c0_i32_0 = arith.constant 0 : i32
    %c0_i32_1 = arith.constant 0 : i32
    %c0_i32_2 = arith.constant 0 : i32
    return %c0_i32, %c0_i32_0, %c0_i32_1 : i32, i32, i32
  }
  func.func @transform_6(%arg0: i32) -> (i32, i32) {
    %c0_i32 = arith.constant 0 : i32
    %c0_i32_0 = arith.constant 0 : i32
    return %c0_i32, %arg0 : i32, i32
  }
}

</mosaic_0001>

<bundles_post_ra>
// kernel: tpu_custom_call.1
= control target key start
LH: loop header
LB: loop body
LE: loop exit
PB: predicated region body
PF: predicated region fallthrough
CT: control target
= control target key end

     0   :  { %vm159_vm0 = vcmask 1043456   ;;  %v2059_v3 = vmov 0   ;;  %vm140_vm1 = vcmask 64512   ;;  %s3128_s0 = inlined_call_operand.vmem [shape: bf16[8,128], index: 0, kind: input, shape index: {}]   ;;  %s3129_s1 = inlined_call_operand.vmem [shape: bf16[96,8], index: 1, kind: input, shape index: {}]   ;;  %s3130_s2 = inlined_call_operand.vmem [shape: f32[96,1], index: 2, kind: input, shape index: {}]   ;;  %s3131_s3 = inlined_call_operand.vmem [shape: bf16[32,32], index: 3, kind: input, shape index: {}]   ;;  %s3132_s4 = inlined_call_operand.vmem [shape: f32[32,1], index: 4, kind: input, shape index: {}]   ;;  %s3133_s5 = inlined_call_operand.vmem [shape: f32[2,64,64], index: 5, kind: input, shape index: {}]   ;;  %s3134_s6 = inlined_call_operand.hbm [shape: f32[32,128], index: 6, kind: output, shape index: {}]  }
   0x1   :  { %v37_v0 = vld [vmem:[%s3128_s0] sm:$0xf]  ;;  %1868 = vset.pattern.permute.xlu1 %v2059_v3  ;;  %1867 = vset.pattern.permute.xlu0 %v2059_v3  ;;  %v40_v4 = vld [vmem:[%s3130_s2 + $0x10] sm:$0xff] }
   0x2   :  { %v161_v1 = vsel %vm159_vm0, %v37_v0, 0  ;;  %v1853_v2 = vld [vmem:[%s3129_s1] sm:$0xff]  ;;  %62 = vperm.xlu1 %1868, %v40_v4   ;;  %1869 = vset.pattern.permute.xlu2 %v2059_v3 }
   0x3   :  { %v38_v5 = vld [vmem:[%s3130_s2] sm:$0xff]  ;;  %170 = vmatpush.bf16.msra.mxu0 %v161_v1 }
   0x4   :  { %52 = vperm.xlu0 %1867, %v38_v5  }
   0x5   :  { %11 = vsyncpa [#allocation3], 0  ;;  %v41_v6 = vld [vmem:[%s3130_s2 + $0x18] sm:$0xff]  ;;  %v39_v7 = vld [vmem:[%s3130_s2 + $0x8] sm:$0xff]  ;;  %vm242_vm2 = vcmask 130048   ;;  %vm308_vm3 = vcmask 523264  }
   0x6   :  { %1757 = vmatmul.msk.bf16.vlgmr.msra.gmra.mxu0 %vm140_vm1, %v1853_v2  ;;  %v44_v8 = vld [vmem:[%s3130_s2 + $0x30] sm:$0xff]  ;;  %v45_v9 = vld [vmem:[%s3130_s2 + $0x38] sm:$0xff]  ;;  %v1854_v10 = vld [vmem:[%s3129_s1 + $0x8] sm:$0xff]  ;;  %s2060_s23 = smov 64   ;;  %s2061_s0 = smov [#allocation2]  }
   0x7   :  { %v47_v11 = vld [vmem:[%s3130_s2 + $0x48] sm:$0xff]  ;;  %v1855_v12 = vld [vmem:[%s3129_s1 + $0x10] sm:$0xff]  ;;  %v42_v14 = vld [vmem:[%s3130_s2 + $0x20] sm:$0xff]  ;;  %s1719_s29 = sshll.u32 %s2061_s0, 4  ;;  %s1721_s8 = sshll.u32 %s3134_s6, 4  ;;  %s1720_s29 = int_to_ptr.vmem [resolvable:$true] %s1719_s29  ;;  %s1722_s8 = int_to_ptr.hbm [resolvable:$true] %s1721_s8 }
   0x8   :  { %v43_v13 = vld [vmem:[%s3130_s2 + $0x28] sm:$0xff]  ;;  %v1856_v15 = vld [vmem:[%s3129_s1 + $0x18] sm:$0xff]  ;;  %v1857_v16 = vld [vmem:[%s3129_s1 + $0x20] sm:$0xff]  ;;  %s2063_s9 = smov 8  }
   0x9   :  { %77 = vperm.xlu2 %1869, %v43_v13   ;;  %v46_v44 = vld [vmem:[%s3130_s2 + $0x40] sm:$0xff]  ;;  %v203_v0 = vld [vmem:[%s3133_s5 + $0x8] sm:$0xff]  ;;  %v204_v4 = vld [vmem:[%s3133_s5 + $0x10] sm:$0xff] }
   0xa   :  { %67 = vperm.xlu1 %1868, %v41_v6   ;;  %v202_v60 = vld [vmem:[%s3133_s5] sm:$0xff]  ;;  %v205_v13 = vld [vmem:[%s3133_s5 + $0x18] sm:$0xff] }
   0xc   :  { %57 = vperm.xlu0 %1867, %v39_v7  }
  0x11   :  { %72 = vperm.xlu2 %1869, %v42_v14  }
  0x12   :  { %82 = vperm.xlu1 %1868, %v44_v8  }
  0x14   :  { %87 = vperm.xlu0 %1867, %v45_v9   ;;  %v1781_v9 = vld [vmem:[%s3133_s5 + $0x40] sm:$0xff] }
  0x16   :  { %1758 = vmatmul.msk.bf16.gmra.mxu0 %vm140_vm1, %v1854_v10 }
  0x1a   :  { %97 = vperm.xlu1 %1868, %v47_v11  }
  0x26   :  { %1759 = vmatmul.msk.bf16.gmra.mxu0 %vm140_vm1, %v1855_v12 }
  0x36   :  { %1760 = vmatmul.msk.bf16.gmra.mxu0 %vm140_vm1, %v1856_v15 }
  0x46   :  { %1761 = vmatmul.msk.bf16.gmra.mxu0 %vm140_vm1, %v1857_v16  ;;  %v207_v16 = vld [vmem:[%s3133_s5 + $0x28] sm:$0xff] }
  0x63   :  { %v78_v29 = vpop.permute.xlu2 %77 }
  0x6b   :  { %v73_v31 = vpop.permute.xlu2 %72 }
  0x74   :  { %v63_v23 = vpop.permute.xlu1 %62 }
  0x76   :  { %v53_v17 = vpop.permute.xlu0 %52 }
  0x7c   :  { %v68_v26 = vpop.permute.xlu1 %67 }
  0x7e   :  { %v58_v20 = vpop.permute.xlu0 %57 }
  0x83   :  { %v172_v18 = vpop.f32.mrf.mxu0 }
  0x84   :  { %v2149_v19 = vadd.f32 %v172_v18, %v53_v17  ;;  %v83_v37 = vpop.permute.xlu1 %82 }
  0x86   :  { %210 = vxpose.xlu2.b32.start [1/2] (short) (narrow) %v2149_v19, 64  ;;  %v88_v38 = vpop.permute.xlu0 %87 }
  0x8b   :  { %v174_v21 = vpop.f32.mrf.mxu0 }
  0x8c   :  { %v2152_v22 = vadd.f32 %v174_v21, %v58_v20 }
  0x8e   :  { %211 = vxpose.xlu2.b32.end [2/2] (short) (narrow) %v2152_v22, 64 }
  0x93   :  { %v177_v24 = vpop.f32.mrf.mxu0 }
  0x94   :  { %v2155_v25 = vadd.f32 %v177_v24, %v63_v23  ;;  %v1782_v23 = vld [vmem:[%s3133_s5 + $0x48] sm:$0xff] }
  0x96   :  { %563 = vxpose.xlu0.b32.start [1/2] (short) (narrow) %v2155_v25, 64 }
  0x9b   :  { %v179_v27 = vpop.f32.mrf.mxu0 }
  0x9c   :  { %v2158_v28 = vadd.f32 %v179_v27, %v68_v26  ;;  %v208_v26 = vld [vmem:[%s3133_s5 + $0x30] sm:$0xff] }
  0x9e   :  { %564 = vxpose.xlu0.b32.end [2/2] (short) (narrow) %v2158_v28, 64 }
  0xa3   :  { %v182_v30 = vpop.f32.mrf.mxu0 }
  0xa4   :  { %v2161_v32 = vadd.f32 %v182_v30, %v73_v31 }
  0xab   :  { %v184_v33 = vpop.f32.mrf.mxu0 }
  0xac   :  { %v2163_v34 = vadd.f32 %v184_v33, %v78_v29  ;;  %v206_v33 = vld [vmem:[%s3133_s5 + $0x20] sm:$0xff] }
  0xae   :  { %v1875_v35 = vpack.i.bf16 %v2161_v32, %v2163_v34  ;;  %281 = vmatpush.msra.mxu1 %v2163_v34 }
  0xb0   :  { %282 = vmatpush.msra.mxu1 %v2161_v32 }
  0xb3   :  { %v187_v36 = vpop.f32.mrf.mxu0 }
  0xb4   :  { %v2169_v40 = vadd.f32 %v187_v36, %v83_v37 }
  0xbb   :  { %v189_v39 = vpop.f32.mrf.mxu0 }
  0xbc   :  { %v2171_v41 = vadd.f32 %v189_v39, %v88_v38 }
  0xbe   :  { %v1870_v42 = vpack.i.bf16 %v2169_v40, %v2171_v41  ;;  %633 = vmatpush.msra.mxu3 %v2171_v41 }
  0xc0   :  { %634 = vmatpush.msra.mxu3 %v2169_v40 }
 0x11f   :  { %v226_v43 = vpop.trf.xlu2 }
 0x120   :  { %1763 = vmatmul.msk.f32.vlgmr.msra.gmra.mxu1 %vm242_vm2, %v226_v43  ;;  %v1783_v43 = vld [vmem:[%s3133_s5 + $0x50] sm:$0xff] }
 0x127   :  { %92 = vperm.xlu2 %1869, %v46_v44   ;;  %v227_v45 = vpop.trf.xlu2 }
 0x128   :  { %1764 = vmatmul.msk.f32.gmra.mxu1 %vm242_vm2, %v227_v45 }
 0x12f   :  { %v228_v46 = vpop.trf.xlu2 }
 0x130   :  { %1765 = vmatmul.msk.f32.gmra.mxu1 %vm242_vm2, %v228_v46 }
 0x137   :  { %v229_v47 = vpop.trf.xlu2 }
 0x138   :  { %1766 = vmatmul.msk.f32.gmra.mxu1 %vm242_vm2, %v229_v47  ;;  %v1784_v47 = vld [vmem:[%s3133_s5 + $0x58] sm:$0xff] }
 0x13a   :  { %v579_v48 = vpop.trf.xlu0 }
 0x13b   :  { %1789 = vmatmul.msk.f32.vlgmr.msra.gmra.mxu3 %vm242_vm2, %v579_v48 }
 0x13f   :  { %v230_v49 = vpop.trf.xlu2 }
 0x140   :  { %1767 = vmatmul.msk.f32.gmra.mxu1 %vm242_vm2, %v230_v49 }
 0x142   :  { %v580_v50 = vpop.trf.xlu0 }
 0x143   :  { %1790 = vmatmul.msk.f32.gmra.mxu3 %vm242_vm2, %v580_v50  ;;  %v1785_v50 = vld [vmem:[%s3133_s5 + $0x60] sm:$0xff] }
 0x147   :  { %v231_v51 = vpop.trf.xlu2 }
 0x148   :  { %1768 = vmatmul.msk.f32.gmra.mxu1 %vm242_vm2, %v231_v51 }
 0x14a   :  { %v581_v52 = vpop.trf.xlu0 }
 0x14b   :  { %1791 = vmatmul.msk.f32.gmra.mxu3 %vm242_vm2, %v581_v52 }
 0x14f   :  { %v232_v53 = vpop.trf.xlu2 }
 0x150   :  { %1769 = vmatmul.msk.f32.gmra.mxu1 %vm242_vm2, %v232_v53  ;;  %v209_v53 = vld [vmem:[%s3133_s5 + $0x38] sm:$0xff] }
 0x152   :  { %v582_v54 = vpop.trf.xlu0 }
 0x153   :  { %1792 = vmatmul.msk.f32.gmra.mxu3 %vm242_vm2, %v582_v54 }
 0x157   :  { %v233_v55 = vpop.trf.xlu2 }
 0x158   :  { %1770 = vmatmul.msk.f32.gmra.mxu1 %vm242_vm2, %v233_v55 }
 0x15a   :  { %v583_v56 = vpop.trf.xlu0 }
 0x15b   :  { %1793 = vmatmul.msk.f32.gmra.mxu3 %vm242_vm2, %v583_v56 }
 0x162   :  { %v584_v57 = vpop.trf.xlu0 }
 0x163   :  { %1794 = vmatmul.msk.f32.gmra.mxu3 %vm242_vm2, %v584_v57 }
 0x16a   :  { %v585_v58 = vpop.trf.xlu0 }
 0x16b   :  { %1795 = vmatmul.msk.f32.gmra.mxu3 %vm242_vm2, %v585_v58  ;;  %v1786_v58 = vld [vmem:[%s3133_s5 + $0x68] sm:$0xff] }
 0x172   :  { %v586_v59 = vpop.trf.xlu0 }
 0x173   :  { %1796 = vmatmul.msk.f32.gmra.mxu3 %vm242_vm2, %v586_v59 }
 0x19d   :  { %v284_v61 = vpop.f32.mrf.mxu1 }
 0x19e   :  { %v2199_v62 = vadd.f32 %v284_v61, %v202_v60 }
 0x1a0   :  { %v309_v63 = vsel %vm308_vm3, %v2199_v62, -inf }
 0x1a1   :  { %310 = vmax.xlane.f32.xlu1 %v309_v63  ;;  %v1787_v63 = vld [vmem:[%s3133_s5 + $0x70] sm:$0xff] }
 0x1a5   :  { %v287_v1 = vpop.f32.mrf.mxu1 }
 0x1a6   :  { %v2206_v2 = vadd.f32 %v287_v1, %v203_v0 }
 0x1a8   :  { %v312_v3 = vsel %vm308_vm3, %v2206_v2, -inf }
 0x1a9   :  { %313 = vmax.xlane.f32.xlu1 %v312_v3  ;;  %v2306_v3 = vld [vmem:[%s3133_s5 + $0x78] sm:$0xff] }
 0x1ad   :  { %v290_v5 = vpop.f32.mrf.mxu1 }
 0x1ae   :  { %v2213_v6 = vadd.f32 %v290_v5, %v204_v4 }
 0x1b0   :  { %v315_v7 = vsel %vm308_vm3, %v2213_v6, -inf }
 0x1b1   :  { %316 = vmax.xlane.f32.xlu1 %v315_v7  ;;  %v2311_v7 = vpop.permute.xlu1 %97 }
 0x1b5   :  { %v293_v8 = vpop.f32.mrf.mxu1 }
 0x1b6   :  { %v2227_v15 = vadd.f32 %v293_v8, %v205_v13 }
 0x1b8   :  { %v318_v20 = vsel %vm308_vm3, %v2227_v15, -inf }
 0x1bd   :  { %v296_v10 = vpop.f32.mrf.mxu1 }
 0x1be   :  { %v636_v11 = vpop.f32.mrf.mxu3  ;;  %v2255_v37 = vadd.f32 %v296_v10, %v206_v33 }
 0x1bf   :  { %v2220_v12 = vadd.f32 %v1781_v9, %v636_v11 }
 0x1c0   :  { %v321_v39 = vsel %vm308_vm3, %v2255_v37, -inf }
 0x1c1   :  { %v660_v14 = vsel %vm308_vm3, %v2220_v12, -inf }
 0x1c2   :  { %661 = vmax.xlane.f32.xlu1 %v660_v14 }
 0x1c5   :  { %v299_v17 = vpop.f32.mrf.mxu1 }
 0x1c6   :  { %v2232_v18 = vadd.f32 %v299_v17, %v207_v16  ;;  %v639_v24 = vpop.f32.mrf.mxu3 }
 0x1c7   :  { %v2244_v27 = vadd.f32 %v1782_v23, %v639_v24 }
 0x1c8   :  { %v324_v21 = vsel %vm308_vm3, %v2232_v18, -inf }
 0x1c9   :  { %325 = vmax.xlane.f32.xlu0 %v324_v21  ;;  %v663_v31 = vsel %vm308_vm3, %v2244_v27, -inf }
 0x1ca   :  { %319 = vmax.xlane.f32.xlu1 %v318_v20 }
 0x1cd   :  { %v302_v29 = vpop.f32.mrf.mxu1 }
 0x1ce   :  { %v2246_v30 = vadd.f32 %v302_v29, %v208_v26  ;;  %v642_v38 = vpop.f32.mrf.mxu3 }
 0x1cf   :  { %v2262_v44 = vadd.f32 %v1783_v43, %v642_v38 }
 0x1d0   :  { %v327_v36 = vsel %vm308_vm3, %v2246_v30, -inf }
 0x1d1   :  { %328 = vmax.xlane.f32.xlu2 %v327_v36  ;;  %v666_v46 = vsel %vm308_vm3, %v2262_v44, -inf }
 0x1d2   :  { %664 = vmax.xlane.f32.xlu1 %v663_v31 }
 0x1d5   :  { %v305_v54 = vpop.f32.mrf.mxu1 }
 0x1d6   :  { %v645_v45 = vpop.f32.mrf.mxu3  ;;  %v2285_v55 = vadd.f32 %v305_v54, %v209_v53 }
 0x1d7   :  { %v2271_v48 = vadd.f32 %v1784_v47, %v645_v45 }
 0x1d8   :  { %v330_v57 = vsel %vm308_vm3, %v2285_v55, -inf }
 0x1d9   :  { %v669_v49 = vsel %vm308_vm3, %v2271_v48, -inf }
 0x1da   :  { %322 = vmax.xlane.f32.xlu1 %v321_v39 }
 0x1dd   :  { %1267 = vrot.lane.b32.xlu0 %v2155_v25, %s2060_s23 }
 0x1de   :  { %v648_v51 = vpop.f32.mrf.mxu3 }
 0x1df   :  { %v2278_v25 = vadd.f32 %v1785_v50, %v648_v51 }
 0x1e1   :  { %v672_v52 = vsel %vm308_vm3, %v2278_v25, -inf }
 0x1e2   :  { %667 = vmax.xlane.f32.xlu1 %v666_v46 }
 0x1e6   :  { %v651_v56 = vpop.f32.mrf.mxu3 }
 0x1e7   :  { %v2292_v59 = vadd.f32 %v1786_v58, %v651_v56 }
 0x1e9   :  { %v675_v61 = vsel %vm308_vm3, %v2292_v59, -inf }
 0x1ea   :  { %670 = vmax.xlane.f32.xlu1 %v669_v49 }
 0x1ee   :  { %v654_v60 = vpop.f32.mrf.mxu3 }
 0x1ef   :  { %v2299_v0 = vadd.f32 %v1787_v63, %v654_v60 }
 0x1f1   :  { %v678_v1 = vsel %vm308_vm3, %v2299_v0, -inf }
 0x1f2   :  { %673 = vmax.xlane.f32.xlu1 %v672_v52 }
 0x1f6   :  { %v657_v4 = vpop.f32.mrf.mxu3 }
 0x1f7   :  { %v2309_v5 = vadd.f32 %v2306_v3, %v657_v4 }
 0x1f9   :  { %v681_v8 = vsel %vm308_vm3, %v2309_v5, -inf }
 0x1fa   :  { %331 = vmax.xlane.f32.xlu1 %v330_v57 }
 0x202   :  { %676 = vmax.xlane.f32.xlu1 %v675_v61 }
 0x20a   :  { %679 = vmax.xlane.f32.xlu1 %v678_v1 }
 0x212   :  { %682 = vmax.xlane.f32.xlu1 %v681_v8 }
 0x214   :  { %v311_v9 = vpop.xlane.xlu1 %310 }
 0x215   :  { %v333_v10 = vsub.f32 %v2199_v62, %v311_v9 }
 0x217   :  { %v341_v11 = vmul.f32 1.442695, %v333_v10 }
 0x219   :  { %1890 = vpow2.f32 %v341_v11 }
 0x21c   :  { %v314_v13 = vpop.xlane.xlu1 %313 }
 0x21d   :  { %v334_v14 = vsub.f32 %v2206_v2, %v314_v13 }
 0x21f   :  { %v2317_v16 = vpop.eup %1890  ;;  %v343_v17 = vmul.f32 1.442695, %v334_v14 }
 0x220   :  { %v357_v20 = vsel %vm308_vm3, %v2317_v16, 0.0 }
 0x221   :  { %1892 = vpow2.f32 %v343_v17  ;;  %358 = vadd.xlane.f32.xlu2 %v357_v20 }
 0x224   :  { %v317_v21 = vpop.xlane.xlu1 %316 }
 0x225   :  { %v335_v23 = vsub.f32 %v2213_v6, %v317_v21 }
 0x227   :  { %v2322_v24 = vpop.eup %1892  ;;  %v345_v26 = vmul.f32 1.442695, %v335_v23 }
 0x228   :  { %v360_v62 = vsel %vm308_vm3, %v2322_v24, 0.0 }
 0x229   :  { %1894 = vpow2.f32 %v345_v26  ;;  %361 = vadd.xlane.f32.xlu1 %v360_v62 }
 0x22f   :  { %v2326_v2 = vpop.eup %1894 }
 0x230   :  { %v363_v29 = vsel %vm308_vm3, %v2326_v2, 0.0 }
 0x231   :  { %364 = vadd.xlane.f32.xlu1 %v363_v29  ;;  %v1858_v29 = vld [vmem:[%s3129_s1 + $0x28] sm:$0xff] }
 0x232   :  { %1762 = vmatmul.msk.bf16.gmra.mxu0 %vm140_vm1, %v1858_v29 }
 0x235   :  { %v662_v31 = vpop.xlane.xlu1 %661 }
 0x236   :  { %v684_v33 = vsub.f32 %v2220_v12, %v662_v31 }
 0x238   :  { %v692_v36 = vmul.f32 1.442695, %v684_v33 }
 0x23a   :  { %1896 = vpow2.f32 %v692_v36 }
 0x23c   :  { %v326_v51 = vpop.xlane.xlu0 %325 }
 0x23d   :  { %v320_v6 = vpop.xlane.xlu1 %319  ;;  %v338_v56 = vsub.f32 %v2232_v18, %v326_v51  ;;  %v48_v51 = vld [vmem:[%s3130_s2 + $0x50] sm:$0xff] }
 0x23e   :  { %v336_v38 = vsub.f32 %v2227_v15, %v320_v6  ;;  %v2341_v15 = vpop.permute.xlu2 %92 }
 0x23f   :  { %v351_v58 = vmul.f32 1.442695, %v338_v56 }
 0x240   :  { %v2332_v39 = vpop.eup %1896  ;;  %v347_v43 = vmul.f32 1.442695, %v336_v38 }
 0x241   :  { %v708_v45 = vsel %vm308_vm3, %v2332_v39, 0.0 }
 0x242   :  { %1898 = vpow2.f32 %v347_v43  ;;  %709 = vadd.xlane.f32.xlu0 %v708_v45 }
 0x245   :  { %v665_v46 = vpop.xlane.xlu1 %664 }
 0x246   :  { %v685_v47 = vsub.f32 %v2244_v27, %v665_v46  ;;  %v329_v60 = vpop.xlane.xlu2 %328 }
 0x248   :  { %v2337_v49 = vpop.eup %1898  ;;  %v694_v50 = vmul.f32 1.442695, %v685_v47 }
 0x249   :  { %v366_v12 = vsel %vm308_vm3, %v2337_v49, 0.0 }
 0x24a   :  { %1900 = vpow2.f32 %v694_v50  ;;  %367 = vadd.xlane.f32.xlu1 %v366_v12 }
 0x24d   :  { %v323_v52 = vpop.xlane.xlu1 %322 }
 0x24e   :  { %v337_v53 = vsub.f32 %v2255_v37, %v323_v52  ;;  %v339_v37 = vsub.f32 %v2246_v30, %v329_v60 }
 0x250   :  { %v2344_v54 = vpop.eup %1900  ;;  %v349_v57 = vmul.f32 1.442695, %v337_v53  ;;  %v353_v8 = vmul.f32 1.442695, %v339_v37 }
 0x251   :  { %v711_v27 = vsel %vm308_vm3, %v2344_v54, 0.0 }
 0x252   :  { %1902 = vpow2.f32 %v349_v57  ;;  %712 = vadd.xlane.f32.xlu1 %v711_v27 }
 0x253   :  { %1904 = vpow2.f32 %v351_v58 }
 0x255   :  { %v668_v61 = vpop.xlane.xlu1 %667 }
 0x256   :  { %v686_v63 = vsub.f32 %v2262_v44, %v668_v61 }
 0x258   :  { %v2350_v1 = vpop.eup %1902  ;;  %v696_v4 = vmul.f32 1.442695, %v686_v63 }
 0x259   :  { %v369_v18 = vsel %vm308_vm3, %v2350_v1, 0.0  ;;  %v2355_v10 = vpop.eup %1904 }
 0x25a   :  { %1906 = vpow2.f32 %v696_v4  ;;  %370 = vadd.xlane.f32.xlu1 %v369_v18  ;;  %v372_v30 = vsel %vm308_vm3, %v2355_v10, 0.0  ;;  %v1268_v4 = vpop.permute.xlu0 %1267 }
 0x25b   :  { %1908 = vpow2.f32 %v353_v8 }
 0x25d   :  { %v671_v9 = vpop.xlane.xlu1 %670 }
 0x25e   :  { %v687_v11 = vsub.f32 %v2271_v48, %v671_v9 }
 0x260   :  { %v2358_v13 = vpop.eup %1906  ;;  %v698_v44 = vmul.f32 1.442695, %v687_v11 }
 0x261   :  { %v714_v14 = vsel %vm308_vm3, %v2358_v13, 0.0  ;;  %v2364_v20 = vpop.eup %1908 }
 0x262   :  { %1910 = vpow2.f32 %v698_v44  ;;  %715 = vadd.xlane.f32.xlu2 %v714_v14  ;;  %373 = vadd.xlane.f32.xlu1 %v372_v30  ;;  %v375_v62 = vsel %vm308_vm3, %v2364_v20, 0.0 }
 0x265   :  { %v674_v17 = vpop.xlane.xlu1 %673 }
 0x266   :  { %v688_v21 = vsub.f32 %v2278_v25, %v674_v17 }
 0x268   :  { %v2367_v23 = vpop.eup %1910  ;;  %v700_v48 = vmul.f32 1.442695, %v688_v21 }
 0x269   :  { %v717_v26 = vsel %vm308_vm3, %v2367_v23, 0.0 }
 0x26a   :  { %1912 = vpow2.f32 %v700_v48  ;;  %718 = vadd.xlane.f32.xlu0 %v717_v26  ;;  %376 = vadd.xlane.f32.xlu1 %v375_v62 }
 0x26d   :  { %v332_v31 = vpop.xlane.xlu1 %331 }
 0x26e   :  { %v340_v25 = vsub.f32 %v2285_v55, %v332_v31 }
 0x270   :  { %v2378_v33 = vpop.eup %1912  ;;  %v355_v36 = vmul.f32 1.442695, %v340_v25 }
 0x271   :  { %v720_v6 = vsel %vm308_vm3, %v2378_v33, 0.0 }
 0x272   :  { %1914 = vpow2.f32 %v355_v36  ;;  %721 = vadd.xlane.f32.xlu1 %v720_v6 }
 0x275   :  { %v677_v38 = vpop.xlane.xlu1 %676 }
 0x276   :  { %v689_v43 = vsub.f32 %v2292_v59, %v677_v38 }
 0x278   :  { %v2383_v45 = vpop.eup %1914  ;;  %v702_v46 = vmul.f32 1.442695, %v689_v43 }
 0x279   :  { %v378_v47 = vsel %vm308_vm3, %v2383_v45, 0.0 }
 0x27a   :  { %1916 = vpow2.f32 %v702_v46  ;;  %1269 = vrot.lane.b32.xlu2 %v2158_v28, %s2060_s23  ;;  %379 = vadd.xlane.f32.xlu1 %v378_v47 }
 0x27d   :  { %v680_v12 = vpop.xlane.xlu1 %679 }
 0x27e   :  { %v690_v59 = vsub.f32 %v2299_v0, %v680_v12 }
 0x280   :  { %v2389_v55 = vpop.eup %1916  ;;  %v704_v52 = vmul.f32 1.442695, %v690_v59 }
 0x281   :  { %v723_v50 = vsel %vm308_vm3, %v2389_v55, 0.0 }
 0x282   :  { %724 = vadd.xlane.f32.xlu0 %v723_v50  ;;  %1918 = vpow2.f32 %v704_v52 }
 0x285   :  { %v683_v56 = vpop.xlane.xlu1 %682 }
 0x288   :  { %v2401_v28 = vpop.eup %1918 }
 0x289   :  { %v726_v53 = vsel %vm308_vm3, %v2401_v28, 0.0 }
 0x293   :  { %907 = vrot.lane.b32.xlu1 %v2149_v19, %s2060_s23  ;;  %v691_v19 = vsub.f32 %v2309_v5, %v683_v56 }
 0x294   :  { %v2429_v61 = vpop.xlane.xlu2 %358 }
 0x295   :  { %v706_v57 = vmul.f32 1.442695, %v691_v19 }
 0x296   :  { %102 = vperm.xlu0 %1867, %v48_v51  }
 0x297   :  { %1920 = vpow2.f32 %v706_v57 }
 0x29c   :  { %v2410_v0 = vpop.xlane.xlu1 %361 }
 0x29d   :  { %v2417_v58 = vpop.eup %1920 }
 0x29e   :  { %909 = vrot.lane.b32.xlu0 %v2152_v22, %s2060_s23  ;;  %v49_v22 = vld [vmem:[%s3130_s2 + $0x58] sm:$0xff]  ;;  %v729_v60 = vsel %vm308_vm3, %v2417_v58, 0.0 }
 0x2a3   :  { %727 = vadd.xlane.f32.xlu2 %v726_v53 }
 0x2a4   :  { %v2412_v27 = vpop.xlane.xlu1 %364 }
 0x2a6   :  { %1876 = vrot.lane.b32.xlu0 %v1875_v35, %s2060_s23 }
 0x2bb   :  { %107 = vperm.xlu2 %1869, %v49_v22  }
 0x2bd   :  { %v2421_v32 = vpop.xlane.xlu1 %367  ;;  %730 = vadd.xlane.f32.xlu1 %v729_v60 }
 0x2be   :  { %v435_v53 = vand.u32 2147483647, %v2421_v32 }
 0x2c5   :  { %v2423_v34 = vpop.xlane.xlu1 %712 }
 0x2cd   :  { %v2425_v35 = vpop.xlane.xlu1 %370 }
 0x2ce   :  { %vm446_vm0 = vweird.f32 %v2425_v35 }
 0x2d5   :  { %v2427_v5 = vpop.xlane.xlu1 %373  ;;  %v2437_v37 = vpop.xlane.xlu2 %715 }
 0x2d6   :  { %1871 = vrot.lane.b32.xlu1 %v1870_v42, %s2060_s23  ;;  %v2448_v42 = vpop.xlane.xlu0 %709  ;;  %vm461_vm12 = vweird.f32 %v2427_v5 }
 0x2dd   :  { %v2435_v63 = vpop.xlane.xlu1 %376  ;;  %v1270_v8 = vpop.permute.xlu2 %1269 }
 0x2de   :  { %1922 = vrcp.f32 %v2435_v63  ;;  %v2465_v43 = vpop.xlane.xlu0 %718  ;;  %vm476_vm6 = vweird.f32 %v2435_v63  ;;  %v482_v59 = vand.u32 2147483648, %v2435_v63  ;;  %v480_v56 = vand.u32 2147483647, %v2435_v63 }
 0x2df   :  { %1924 = vrcp.f32 %v2427_v5 }
 0x2e0   :  { %1926 = vrcp.f32 %v2425_v35  ;;  %vm481_vm13 = vcmp.eq.f32.partialorder %v480_v56, 8.507059e+37 }
 0x2e1   :  { %1273 = vxpose.xlu2.b32.start [1/2] (short) (narrow) %v1268_v4, 64  ;;  %1928 = vrcp.f32 %v2421_v32 }
 0x2e4   :  { %v1923_v9 = vpop.eup %1922 }
 0x2e5   :  { %v2440_v18 = vpop.xlane.xlu1 %721  ;;  %v2444_v11 = vpop.eup %1924  ;;  %v472_v40 = vmul.f32 %v1923_v9, %v2435_v63  ;;  %vm477_vm4 = vweird.f32 %v1923_v9 }
 0x2e6   :  { %v457_v44 = vmul.f32 %v2444_v11, %v2427_v5  ;;  %v2452_v14 = vpop.eup %1926  ;;  %vm2472_vm8 = vmor %vm476_vm6, %vm477_vm4  ;;  %vm462_vm10 = vweird.f32 %v2444_v11  ;;  %vm431_vm6 = vweird.f32 %v2421_v32 }
 0x2e7   :  { %v473_v30 = vsub.f32 1.0, %v472_v40  ;;  %v2455_v17 = vpop.eup %1928  ;;  %v442_v48 = vmul.f32 %v2452_v14, %v2425_v35  ;;  %vm463_vm14 = vmor %vm461_vm12, %vm462_vm10  ;;  %vm447_vm15 = vweird.f32 %v2452_v14  ;;  %vm416_vm10 = vweird.f32 %v2412_v27 }
 0x2e8   :  { %v458_v26 = vsub.f32 1.0, %v457_v44  ;;  %v427_v31 = vmul.f32 %v2455_v17, %v2421_v32  ;;  %v483_v44 = vor.u32 1.1754944e-38, %v482_v59  ;;  %vm448_vm4 = vmor %vm446_vm0, %vm447_vm15 }
 0x2e9   :  { %1274 = vxpose.xlu2.b32.end [2/2] (short) (narrow) %v1270_v8, 64  ;;  %v474_v62 = vmul.f32 %v1923_v9, %v473_v30  ;;  %v443_v6 = vsub.f32 1.0, %v442_v48  ;;  %v465_v48 = vand.u32 2147483647, %v2427_v5 }
 0x2ea   :  { %v459_v38 = vmul.f32 %v2444_v11, %v458_v26  ;;  %v428_v19 = vsub.f32 1.0, %v427_v31 }
 0x2eb   :  { %v475_v12 = vadd.f32 %v1923_v9, %v474_v62  ;;  %v444_v57 = vmul.f32 %v2452_v14, %v443_v6  ;;  %vm466_vm1 = vcmp.eq.f32.partialorder %v465_v48, 8.507059e+37  ;;  %v407_v48 = vand.u32 2147483648, %v2410_v0 }
 0x2ec   :  { %v460_v40 = vadd.f32 %v2444_v11, %v459_v38  ;;  %v429_v31 = vmul.f32 %v2455_v17, %v428_v19 }
 0x2ed   :  { %v380_v41 = vpop.xlane.xlu1 %379  ;;  %v479_v8 = vsel %vm2472_vm8, %v1923_v9, %v475_v12 }
 0x2ee   :  { %1930 = vrcp.f32 %v380_v41  ;;  %v497_v46 = vand.u32 2147483648, %v380_v41  ;;  %v495_v50 = vand.u32 2147483647, %v380_v41  ;;  %vm491_vm7 = vweird.f32 %v380_v41 }
 0x2ef   :  { %1932 = vrcp.f32 %v2412_v27 }
 0x2f0   :  { %1934 = vrcp.f32 %v2410_v0  ;;  %v498_v22 = vor.u32 1.1754944e-38, %v497_v46  ;;  %vm496_vm11 = vcmp.eq.f32.partialorder %v495_v50, 8.507059e+37  ;;  %v450_v46 = vand.u32 2147483647, %v2425_v35 }
 0x2f1   :  { %1936 = vrcp.f32 %v2429_v61 }
 0x2f4   :  { %v1931_v21 = vpop.eup %1930 }
 0x2f5   :  { %v487_v29 = vmul.f32 %v1931_v21, %v380_v41  ;;  %v2462_v36 = vpop.eup %1932  ;;  %vm492_vm5 = vweird.f32 %v1931_v21  ;;  %v467_v41 = vand.u32 2147483648, %v2427_v5  ;;  %v2492_v9 = vpop.xlane.xlu0 %724  ;;  %v445_v5 = vadd.f32 %v2452_v14, %v444_v57 }
 0x2f6   :  { %v412_v51 = vmul.f32 %v2462_v36, %v2412_v27  ;;  %vm493_vm9 = vmor %vm491_vm7, %vm492_vm5  ;;  %v2479_v60 = vpop.eup %1934  ;;  %vm432_vm5 = vweird.f32 %v2455_v17  ;;  %vm451_vm7 = vcmp.eq.f32.partialorder %v450_v46, 8.507059e+37 }
 0x2f7   :  { %v488_v25 = vsub.f32 1.0, %v487_v29  ;;  %v2488_v26 = vpop.eup %1936  ;;  %v484_v29 = vsel %vm481_vm13, %v483_v44, %v479_v8  ;;  %v468_v6 = vor.u32 1.1754944e-38, %v467_v41  ;;  %v449_v59 = vsel %vm448_vm4, %v2452_v14, %v445_v5  ;;  %vm433_vm8 = vmor %vm431_vm6, %vm432_vm5 }
 0x2f8   :  { %v413_v62 = vsub.f32 1.0, %v412_v51  ;;  %v485_v38 = vmul.f32 %v2364_v20, %v484_v29  ;;  %v430_v51 = vadd.f32 %v2455_v17, %v429_v31  ;;  %v437_v20 = vand.u32 2147483648, %v2421_v32 }
 0x2f9   :  { %v489_v47 = vmul.f32 %v1931_v21, %v488_v25  ;;  %v452_v25 = vand.u32 2147483648, %v2425_v35  ;;  %v420_v41 = vand.u32 2147483647, %v2412_v27  ;;  %vm402_vm13 = vweird.f32 %v2479_v60 }
 0x2fa   :  { %v438_v8 = vor.u32 1.1754944e-38, %v437_v20  ;;  %v408_v5 = vor.u32 1.1754944e-38, %v407_v48  ;;  %vm386_vm4 = vweird.f32 %v2429_v61 }
 0x2fb   :  { %v490_v52 = vadd.f32 %v1931_v21, %v489_v47  ;;  %v382_v47 = vmul.f32 %v2488_v26, %v2429_v61  ;;  %vm421_vm15 = vcmp.eq.f32.partialorder %v420_v41, 8.507059e+37 }
 0x2fd   :  { %v494_v4 = vsel %vm493_vm9, %v1931_v21, %v490_v52  ;;  %v397_v21 = vmul.f32 %v2479_v60, %v2410_v0  ;;  %v453_v52 = vor.u32 1.1754944e-38, %v452_v25  ;;  %v383_v56 = vsub.f32 1.0, %v382_v47 }
 0x2fe   :  { %v499_v63 = vsel %vm496_vm11, %v498_v22, %v494_v4  ;;  %v434_v22 = vsel %vm433_vm8, %v2455_v17, %v430_v51  ;;  %vm417_vm9 = vweird.f32 %v2462_v36  ;;  %vm436_vm11 = vcmp.eq.f32.partialorder %v435_v53, 8.507059e+37 }
 0x2ff   :  { %v500_v30 = vmul.f32 %v2383_v45, %v499_v63  ;;  %v464_v45 = vsel %vm463_vm14, %v2444_v11, %v460_v40  ;;  %v398_v50 = vsub.f32 1.0, %v397_v21  ;;  %v414_v11 = vmul.f32 %v2462_v36, %v413_v62  ;;  %vm418_vm12 = vmor %vm416_vm10, %vm417_vm9 }
 0x300   :  { %v469_v12 = vsel %vm466_vm1, %v468_v6, %v464_v45  ;;  %v454_v57 = vsel %vm451_vm7, %v453_v52, %v449_v59  ;;  %v439_v44 = vsel %vm436_vm11, %v438_v8, %v434_v22  ;;  %v384_v17 = vmul.f32 %v2488_v26, %v383_v56 }
 0x301   :  { %1771 = vmatpush.xpose.msk.msra.mxu2 %vm308_vm3, %v500_v30  ;;  %v470_v35 = vmul.f32 %v2355_v10, %v469_v12  ;;  %v399_v14 = vmul.f32 %v2479_v60, %v398_v50  ;;  %v415_v4 = vadd.f32 %v2462_v36, %v414_v11  ;;  %v422_v10 = vand.u32 2147483648, %v2412_v27  ;;  %v192_v50 = vpop.f32.mrf.mxu0 }
 0x302   :  { %v455_v32 = vmul.f32 %v2350_v1, %v454_v57  ;;  %vm401_vm14 = vweird.f32 %v2410_v0  ;;  %v440_v1 = vmul.f32 %v2337_v49, %v439_v44  ;;  %v405_v27 = vand.u32 2147483647, %v2410_v0 }
 0x303   :  { %v419_v63 = vsel %vm418_vm12, %v2462_v36, %v415_v4  ;;  %v400_v30 = vadd.f32 %v2479_v60, %v399_v14  ;;  %v423_v21 = vor.u32 1.1754944e-38, %v422_v10  ;;  %vm403_vm0 = vmor %vm401_vm14, %vm402_vm13  ;;  %v385_v31 = vadd.f32 %v2488_v26, %v384_v17 }
 0x304   :  { %vm387_vm1 = vweird.f32 %v2488_v26  ;;  %v392_v45 = vand.u32 2147483648, %v2429_v61  ;;  %vm406_vm5 = vcmp.eq.f32.partialorder %v405_v27, 8.507059e+37  ;;  %v390_v0 = vand.u32 2147483647, %v2429_v61 }
 0x305   :  { %1772 = vmatpush.xpose.msk.msra.mxu2 %vm308_vm3, %v485_v38  ;;  %v908_v40 = vpop.permute.xlu1 %907  ;;  %v424_v29 = vsel %vm421_vm15, %v423_v21, %v419_v63  ;;  %v404_v36 = vsel %vm403_vm0, %v2479_v60, %v400_v30  ;;  %vm388_vm6 = vmor %vm386_vm4, %vm387_vm1  ;;  %v2551_v11 = vadd.f32 %v192_v50, %v2341_v15  ;;  %vm812_vm0 = vweird.f32 %v2492_v9 }
 0x306   :  { %v425_v49 = vmul.f32 %v2326_v2, %v424_v29  ;;  %v409_v25 = vsel %vm406_vm5, %v408_v5, %v404_v36  ;;  %v389_v60 = vsel %vm388_vm6, %v2488_v26, %v385_v31  ;;  %v393_v6 = vor.u32 1.1754944e-38, %v392_v45 }
 0x307   :  { %v410_v38 = vmul.f32 %v2322_v24, %v409_v25  ;;  %vm391_vm7 = vcmp.eq.f32.partialorder %v390_v0, 8.507059e+37  ;;  %v818_v25 = vand.u32 2147483648, %v2492_v9  ;;  %vm797_vm6 = vweird.f32 %v2440_v18 }
 0x308   :  { %v2516_v19 = vpop.permute.xlu0 %102  ;;  %v394_v47 = vsel %vm391_vm7, %v393_v6, %v389_v60 }
 0x309   :  { %1773 = vmatpush.xpose.msk.msra.mxu2 %vm308_vm3, %v470_v35  ;;  %v395_v2 = vmul.f32 %v2317_v16, %v394_v47  ;;  %v194_v24 = vpop.f32.mrf.mxu0 }
 0x30a   :  { %v2556_v59 = vadd.f32 %v194_v24, %v2311_v7 }
 0x30b   :  { %913 = vxpose.xlu1.b32.start [1/2] (short) (narrow) %v908_v40, 64 }
 0x30d   :  { %1774 = vmatpush.xpose.msk.msra.mxu2 %vm308_vm3, %v455_v32 }
 0x310   :  { %v910_v62 = vpop.permute.xlu0 %909 }
 0x311   :  { %1775 = vmatpush.xpose.msk.msra.mxu2 %vm308_vm3, %v440_v1 }
 0x313   :  { %914 = vxpose.xlu1.b32.end [2/2] (short) (narrow) %v910_v62, 64 }
 0x315   :  { %1776 = vmatpush.xpose.msk.msra.mxu2 %vm308_vm3, %v425_v49 }
 0x316   :  { %v728_v26 = vpop.xlane.xlu2 %727 }
 0x317   :  { %1938 = vrcp.f32 %v728_v26  ;;  %vm827_vm10 = vweird.f32 %v728_v26  ;;  %v833_v48 = vand.u32 2147483648, %v728_v26  ;;  %v831_v62 = vand.u32 2147483647, %v728_v26 }
 0x318   :  { %v1877_v46 = vpop.permute.xlu0 %1876  ;;  %1940 = vrcp.f32 %v2492_v9 }
 0x319   :  { %1777 = vmatpush.xpose.msk.msra.mxu2 %vm308_vm3, %v410_v38  ;;  %v1878_v12 = vunpack.i.l.bf16 %v1877_v46  ;;  %v1879_v61 = vunpack.i.h.bf16 %v1877_v46  ;;  %1942 = vrcp.f32 %v2440_v18  ;;  %v834_v60 = vor.u32 1.1754944e-38, %v833_v48 }
 0x31a   :  { %1944 = vrcp.f32 %v2465_v43  ;;  %vm832_vm1 = vcmp.eq.f32.partialorder %v831_v62, 8.507059e+37  ;;  %v816_v46 = vand.u32 2147483647, %v2492_v9  ;;  %v758_v48 = vand.u32 2147483648, %v2423_v34 }
 0x31b   :  { %991 = vmatpush.msrb.mxu1 %v1878_v12  ;;  %v743_v62 = vand.u32 2147483648, %v2448_v42 }
 0x31c   :  { %vm817_vm7 = vcmp.eq.f32.partialorder %v816_v46, 8.507059e+37 }
 0x31d   :  { %1778 = vmatpush.xpose.msk.msra.mxu2 %vm308_vm3, %v395_v2  ;;  %992 = vmatpush.msrb.mxu1 %v1879_v61  ;;  %v1939_v16 = vpop.eup %1938 }
 0x31e   :  { %v2562_v51 = vpop.eup %1940  ;;  %v823_v15 = vmul.f32 %v1939_v16, %v728_v26  ;;  %vm828_vm8 = vweird.f32 %v1939_v16  ;;  %v819_v26 = vor.u32 1.1754944e-38, %v818_v25  ;;  %v197_v25 = vpop.f32.mrf.mxu0 }
 0x31f   :  { %v808_v7 = vmul.f32 %v2562_v51, %v2492_v9  ;;  %v2567_v52 = vpop.eup %1942  ;;  %vm2583_vm12 = vmor %vm827_vm10, %vm828_vm8  ;;  %vm813_vm14 = vweird.f32 %v2562_v51  ;;  %v803_v9 = vand.u32 2147483648, %v2440_v18  ;;  %vm782_vm10 = vweird.f32 %v2465_v43 }
 0x320   :  { %1779 = vmatmul.msk.f32.vlgmr.msra.gmra.mxu2 %vm308_vm3, %v2551_v11  ;;  %v824_v35 = vsub.f32 1.0, %v823_v15  ;;  %v2570_v53 = vpop.eup %1944  ;;  %v793_v57 = vmul.f32 %v2567_v52, %v2440_v18  ;;  %vm814_vm4 = vmor %vm812_vm0, %vm813_vm14  ;;  %vm798_vm5 = vweird.f32 %v2567_v52  ;;  %v801_v15 = vand.u32 2147483647, %v2440_v18 }
 0x321   :  { %v809_v14 = vsub.f32 1.0, %v808_v7  ;;  %v778_v10 = vmul.f32 %v2570_v53, %v2465_v43  ;;  %vm799_vm8 = vmor %vm797_vm6, %vm798_vm5  ;;  %vm767_vm14 = vweird.f32 %v2437_v37 }
 0x322   :  { %v825_v22 = vmul.f32 %v1939_v16, %v824_v35  ;;  %v794_v32 = vsub.f32 1.0, %v793_v57 }
 0x323   :  { %v810_v41 = vmul.f32 %v2562_v51, %v809_v14  ;;  %v779_v29 = vsub.f32 1.0, %v778_v10  ;;  %v804_v14 = vor.u32 1.1754944e-38, %v803_v9 }
 0x324   :  { %v826_v30 = vadd.f32 %v1939_v16, %v825_v22  ;;  %v795_v36 = vmul.f32 %v2567_v52, %v794_v32  ;;  %v786_v22 = vand.u32 2147483647, %v2465_v43 }
 0x325   :  { %v811_v0 = vadd.f32 %v2562_v51, %v810_v41  ;;  %v780_v61 = vmul.f32 %v2570_v53, %v779_v29  ;;  %v773_v41 = vand.u32 2147483648, %v2437_v37  ;;  %v759_v29 = vor.u32 1.1754944e-38, %v758_v48  ;;  %v2018_v48 = vld [vmem:[%s3133_s5 + $0x28] sm:$0xff] }
 0x326   :  { %v830_v49 = vsel %vm2583_vm12, %v1939_v16, %v826_v30 }
 0x327   :  { %v835_v2 = vsel %vm832_vm1, %v834_v60, %v830_v49  ;;  %v815_v24 = vsel %vm814_vm4, %v2562_v51, %v811_v0  ;;  %v781_v57 = vadd.f32 %v2570_v53, %v780_v61  ;;  %vm752_vm4 = vweird.f32 %v2423_v34 }
 0x328   :  { %1780 = vmatmul.msk.f32.gmra.mxu2 %vm308_vm3, %v2556_v59  ;;  %v836_v16 = vmul.f32 %v2401_v28, %v835_v2  ;;  %v820_v35 = vsel %vm817_vm7, %v819_v26, %v815_v24  ;;  %v788_v28 = vand.u32 2147483648, %v2465_v43  ;;  %v771_v43 = vand.u32 2147483647, %v2437_v37 }
 0x329   :  { %v821_v18 = vmul.f32 %v2389_v55, %v820_v35 }
 0x32a   :  { %vm772_vm5 = vcmp.eq.f32.partialorder %v771_v43, 8.507059e+37 }
 0x330   :  { %v731_v20 = vpop.xlane.xlu1 %730 }
 0x331   :  { %1946 = vrcp.f32 %v731_v20  ;;  %v848_v44 = vand.u32 2147483648, %v731_v20  ;;  %v846_v63 = vand.u32 2147483647, %v731_v20  ;;  %vm842_vm11 = vweird.f32 %v731_v20 }
 0x332   :  { %1948 = vrcp.f32 %v2437_v37 }
 0x333   :  { %1950 = vrcp.f32 %v2423_v34  ;;  %v849_v31 = vor.u32 1.1754944e-38, %v848_v44  ;;  %vm847_vm15 = vcmp.eq.f32.partialorder %v846_v63, 8.507059e+37  ;;  %v789_v44 = vor.u32 1.1754944e-38, %v788_v28 }
 0x334   :  { %1952 = vrcp.f32 %v2448_v42 }
 0x337   :  { %v1947_v56 = vpop.eup %1946 }
 0x338   :  { %v838_v4 = vmul.f32 %v1947_v56, %v731_v20  ;;  %v2577_v40 = vpop.eup %1948  ;;  %vm843_vm9 = vweird.f32 %v1947_v56 }
 0x339   :  { %v763_v21 = vmul.f32 %v2577_v40, %v2437_v37  ;;  %vm844_vm13 = vmor %vm842_vm11, %vm843_vm9  ;;  %v2589_v45 = vpop.eup %1950  ;;  %vm783_vm9 = vweird.f32 %v2570_v53  ;;  %vm802_vm11 = vcmp.eq.f32.partialorder %v801_v15, 8.507059e+37  ;;  %v756_v37 = vand.u32 2147483647, %v2423_v34 }
 0x33a   :  { %v839_v8 = vsub.f32 1.0, %v838_v4  ;;  %v2598_v47 = vpop.eup %1952  ;;  %v748_v50 = vmul.f32 %v2589_v45, %v2423_v34  ;;  %vm784_vm12 = vmor %vm782_vm10, %vm783_vm9  ;;  %vm753_vm1 = vweird.f32 %v2589_v45  ;;  %v741_v34 = vand.u32 2147483647, %v2448_v42 }
 0x33b   :  { %v764_v12 = vsub.f32 1.0, %v763_v21  ;;  %v733_v20 = vmul.f32 %v2598_v47, %v2448_v42  ;;  %v774_v21 = vor.u32 1.1754944e-38, %v773_v41  ;;  %vm754_vm6 = vmor %vm752_vm4, %vm753_vm1  ;;  %vm738_vm7 = vweird.f32 %v2598_v47 }
 0x33c   :  { %v840_v17 = vmul.f32 %v1947_v56, %v839_v8  ;;  %v749_v7 = vsub.f32 1.0, %v748_v50  ;;  %vm757_vm9 = vcmp.eq.f32.partialorder %v756_v37, 8.507059e+37 }
 0x33d   :  { %v765_v51 = vmul.f32 %v2577_v40, %v764_v12  ;;  %v734_v4 = vsub.f32 1.0, %v733_v20 }
 0x33e   :  { %v841_v1 = vadd.f32 %v1947_v56, %v840_v17  ;;  %v750_v8 = vmul.f32 %v2589_v45, %v749_v7 }
 0x33f   :  { %v766_v32 = vadd.f32 %v2577_v40, %v765_v51  ;;  %v735_v63 = vmul.f32 %v2598_v47, %v734_v4 }
 0x340   :  { %v845_v5 = vsel %vm844_vm13, %v1947_v56, %v841_v1  ;;  %vm768_vm13 = vweird.f32 %v2577_v40  ;;  %v751_v30 = vadd.f32 %v2589_v45, %v750_v8 }
 0x341   :  { %v850_v6 = vsel %vm847_vm15, %v849_v31, %v845_v5  ;;  %vm787_vm15 = vcmp.eq.f32.partialorder %v786_v22, 8.507059e+37  ;;  %vm769_vm0 = vmor %vm767_vm14, %vm768_vm13  ;;  %v736_v27 = vadd.f32 %v2598_v47, %v735_v63 }
 0x342   :  { %v851_v38 = vmul.f32 %v2417_v58, %v850_v6  ;;  %v796_v58 = vadd.f32 %v2567_v52, %v795_v36 }
 0x344   :  { %1797 = vmatpush.xpose.msk.msrb.mxu2 %vm308_vm3, %v851_v38  ;;  %v800_v56 = vsel %vm799_vm8, %v2567_v52, %v796_v58  ;;  %v785_v52 = vsel %vm784_vm12, %v2570_v53, %v781_v57  ;;  %v770_v53 = vsel %vm769_vm0, %v2577_v40, %v766_v32  ;;  %v755_v40 = vsel %vm754_vm6, %v2589_v45, %v751_v30  ;;  %v108_v38 = vpop.permute.xlu2 %107 }
 0x345   :  { %v805_v10 = vsel %vm802_vm11, %v804_v14, %v800_v56  ;;  %v790_v17 = vsel %vm787_vm15, %v789_v44, %v785_v52  ;;  %v775_v1 = vsel %vm772_vm5, %v774_v21, %v770_v53  ;;  %vm737_vm8 = vweird.f32 %v2448_v42 }
 0x346   :  { %v806_v55 = vmul.f32 %v2378_v33, %v805_v10  ;;  %v791_v33 = vmul.f32 %v2367_v23, %v790_v17  ;;  %v776_v23 = vmul.f32 %v2358_v13, %v775_v1  ;;  %v760_v36 = vsel %vm757_vm9, %v759_v29, %v755_v40  ;;  %vm739_vm10 = vmor %vm737_vm8, %vm738_vm7  ;;  %v2019_v1 = vld [vmem:[%s3133_s5 + $0x38] sm:$0xff] }
 0x347   :  { %v740_v31 = vsel %vm739_vm10, %v2598_v47, %v736_v27  ;;  %v744_v45 = vor.u32 1.1754944e-38, %v743_v62  ;;  %v761_v5 = vmul.f32 %v2344_v54, %v760_v36  ;;  %vm742_vm11 = vcmp.eq.f32.partialorder %v741_v34, 8.507059e+37  ;;  %v199_v54 = vpop.f32.mrf.mxu0  ;;  %v2020_v62 = vld [vmem:[%s3133_s5 + $0x30] sm:$0xff] }
 0x348   :  { %1798 = vmatpush.xpose.msk.msrb.mxu2 %vm308_vm3, %v836_v16  ;;  %v1872_v0 = vpop.permute.xlu1 %1871  ;;  %v2657_v42 = vadd.f32 %v197_v25, %v2516_v19  ;;  %v2661_v46 = vadd.f32 %v199_v54, %v108_v38  ;;  %v2021_v34 = vld [vmem:[%s3133_s5 + $0x70] sm:$0xff]  ;;  %v2025_v38 = vld [vmem:[%s3133_s5 + $0x18] sm:$0xff] }
 0x349   :  { %v745_v49 = vsel %vm742_vm11, %v744_v45, %v740_v31  ;;  %v1873_v60 = vunpack.i.l.bf16 %v1872_v0  ;;  %v1874_v6 = vunpack.i.h.bf16 %v1872_v0  ;;  %v2022_v45 = vld [vmem:[%s3133_s5 + $0x68] sm:$0xff]  ;;  %v2023_v0 = vld [vmem:[%s3133_s5 + $0x20] sm:$0xff] }
 0x34a   :  { %v746_v13 = vmul.f32 %v2332_v39, %v745_v49 }
 0x34c   :  { %1799 = vmatpush.xpose.msk.msrb.mxu2 %vm308_vm3, %v821_v18 }
 0x350   :  { %1800 = vmatpush.xpose.msk.msrb.mxu2 %vm308_vm3, %v806_v55 }
 0x354   :  { %1801 = vmatpush.xpose.msk.msrb.mxu2 %vm308_vm3, %v791_v33 }
 0x358   :  { %1802 = vmatpush.xpose.msk.msrb.mxu2 %vm308_vm3, %v776_v23 }
 0x35c   :  { %1803 = vmatpush.xpose.msk.msrb.mxu2 %vm308_vm3, %v761_v5 }
 0x360   :  { %1804 = vmatpush.xpose.msk.msrb.mxu2 %vm308_vm3, %v746_v13 }
 0x363   :  { %1805 = vmatmul.msk.f32.vlgmr.msrb.gmra.mxu2 %vm308_vm3, %v2657_v42 }
 0x364   :  { %1351 = vmatpush.msra.mxu2 %v1873_v60  ;;  %v2024_v60 = vld [vmem:[%s3133_s5 + $0x60] sm:$0xff] }
 0x366   :  { %1352 = vmatpush.msra.mxu2 %v1874_v6 }
 0x36b   :  { %1806 = vmatmul.msk.f32.gmra.mxu2 %vm308_vm3, %v2661_v46 }
 0x37a   :  { %v1289_v39 = vpop.trf.xlu2 }
 0x37b   :  { %1825 = vmatmul.msk.f32.vlgmr.msra.gmra.mxu2 %vm242_vm2, %v1289_v39 }
 0x382   :  { %v1290_v47 = vpop.trf.xlu2 }
 0x383   :  { %1826 = vmatmul.msk.f32.gmra.mxu2 %vm242_vm2, %v1290_v47 }
 0x38a   :  { %v1291_v19 = vpop.trf.xlu2 }
 0x38b   :  { %1827 = vmatmul.msk.f32.gmra.mxu2 %vm242_vm2, %v1291_v19  ;;  %v2026_v19 = vld [vmem:[%s3133_s5 + $0x58] sm:$0xff] }
 0x392   :  { %v1292_v50 = vpop.trf.xlu2 }
 0x393   :  { %1828 = vmatmul.msk.f32.gmra.mxu2 %vm242_vm2, %v1292_v50 }
 0x39a   :  { %v1293_v12 = vpop.trf.xlu2 }
 0x39b   :  { %1829 = vmatmul.msk.f32.gmra.mxu2 %vm242_vm2, %v1293_v12 }
 0x3a2   :  { %v1294_v2 = vpop.trf.xlu2 }
 0x3a3   :  { %1830 = vmatmul.msk.f32.gmra.mxu2 %vm242_vm2, %v1294_v2  ;;  %v2679_v7 = vpop.f32.mrf.mxu2  ;;  %v2027_v2 = vld [vmem:[%s3133_s5 + $0x10] sm:$0xff] }
 0x3aa   :  { %v1295_v61 = vpop.trf.xlu2 }
 0x3ab   :  { %1831 = vmatmul.msk.f32.gmra.mxu2 %vm242_vm2, %v1295_v61  ;;  %v2682_v51 = vpop.f32.mrf.mxu2 }
 0x3af   :  { %v929_v24 = vpop.trf.xlu1 }
 0x3b0   :  { %1807 = vmatmul.msk.f32.vlgmr.msrb.gmra.mxu1 %vm242_vm2, %v929_v24 }
 0x3b2   :  { %v1296_v58 = vpop.trf.xlu2 }
 0x3b3   :  { %1832 = vmatmul.msk.f32.gmra.mxu2 %vm242_vm2, %v1296_v58  ;;  %v2028_v58 = vld [vmem:[%s3133_s5 + $0x50] sm:$0xff] }
 0x3b7   :  { %v930_v9 = vpop.trf.xlu1 }
 0x3b8   :  { %1808 = vmatmul.msk.f32.gmra.mxu1 %vm242_vm2, %v930_v9 }
 0x3bf   :  { %v931_v26 = vpop.trf.xlu1 }
 0x3c0   :  { %1809 = vmatmul.msk.f32.gmra.mxu1 %vm242_vm2, %v931_v26 }
 0x3c7   :  { %v932_v16 = vpop.trf.xlu1 }
 0x3c8   :  { %1810 = vmatmul.msk.f32.gmra.mxu1 %vm242_vm2, %v932_v16  ;;  %v2029_v16 = vld [vmem:[%s3133_s5 + $0x8] sm:$0xff] }
 0x3cf   :  { %v933_v15 = vpop.trf.xlu1 }
 0x3d0   :  { %1811 = vmatmul.msk.f32.gmra.mxu1 %vm242_vm2, %v933_v15 }
 0x3d7   :  { %v934_v20 = vpop.trf.xlu1 }
 0x3d8   :  { %1812 = vmatmul.msk.f32.gmra.mxu1 %vm242_vm2, %v934_v20 }
 0x3df   :  { %v935_v35 = vpop.trf.xlu1 }
 0x3e0   :  { %1813 = vmatmul.msk.f32.gmra.mxu1 %vm242_vm2, %v935_v35  ;;  %v2030_v35 = vld [vmem:[%s3133_s5 + $0x48] sm:$0xff] }
 0x3e6   :  { %v2685_v57 = vpop.f32.mrf.mxu2 }
 0x3e7   :  { %v936_v56 = vpop.trf.xlu1 }
 0x3e8   :  { %1814 = vmatmul.msk.f32.gmra.mxu1 %vm242_vm2, %v936_v56 }
 0x3ee   :  { %v2687_v28 = vpop.f32.mrf.mxu2 }
 0x3fe   :  { %v2689_v14 = vpop.f32.mrf.mxu2 }
 0x406   :  { %v2691_v18 = vpop.f32.mrf.mxu2 }
 0x407   :  { %v2782_v56 = vadd.f32 %v2030_v35, %v2691_v18  ;;  %v2032_v18 = vld [vmem:[%s3133_s5 + $0x40] sm:$0xff] }
 0x40e   :  { %v1360_v22 = vpop.f32.mrf.mxu2 }
 0x40f   :  { %v2767_v9 = vadd.f32 %v2028_v58, %v1360_v22  ;;  %v1381_v22 = vsel %vm308_vm3, %v2782_v56, -inf }
 0x411   :  { %v1384_v26 = vsel %vm308_vm3, %v2767_v9, -inf }
 0x416   :  { %v1363_v4 = vpop.f32.mrf.mxu2 }
 0x417   :  { %v2753_v50 = vadd.f32 %v2026_v19, %v1363_v4  ;;  %v2031_v4 = vld [vmem:[%s3133_s5] sm:$0xff] }
 0x419   :  { %v1387_v12 = vsel %vm308_vm3, %v2753_v50, -inf }
 0x41e   :  { %v1366_v10 = vpop.f32.mrf.mxu2 }
 0x41f   :  { %v2739_v6 = vadd.f32 %v2024_v60, %v1366_v10 }
 0x421   :  { %v1390_v54 = vsel %vm308_vm3, %v2739_v6, -inf }
 0x426   :  { %v1369_v8 = vpop.f32.mrf.mxu2 }
 0x427   :  { %v2725_v5 = vadd.f32 %v2022_v45, %v1369_v8 }
 0x429   :  { %v1393_v49 = vsel %vm308_vm3, %v2725_v5, -inf }
 0x42d   :  { %v2693_v52 = vpop.f32.mrf.mxu1 }
 0x42e   :  { %v1372_v32 = vpop.f32.mrf.mxu2  ;;  %v2790_v10 = vadd.f32 %v2031_v4, %v2693_v52 }
 0x42f   :  { %v2718_v36 = vadd.f32 %v2021_v34, %v1372_v32  ;;  %v2798_v32 = vadd.f32 %v2032_v18, %v2689_v14 }
 0x430   :  { %v1018_v8 = vsel %vm308_vm3, %v2790_v10, -inf }
 0x431   :  { %v1396_v31 = vsel %vm308_vm3, %v2718_v36, -inf }
 0x435   :  { %v997_v41 = vpop.f32.mrf.mxu1 }
 0x436   :  { %v1375_v44 = vpop.f32.mrf.mxu2  ;;  %v2774_v15 = vadd.f32 %v2029_v16, %v997_v41  ;;  %v1378_v41 = vsel %vm308_vm3, %v2798_v32, -inf }
 0x437   :  { %v2696_v55 = vadd.f32 %v2306_v3, %v1375_v44 }
 0x438   :  { %v1021_v20 = vsel %vm308_vm3, %v2774_v15, -inf }
 0x439   :  { %v1399_v43 = vsel %vm308_vm3, %v2696_v55, -inf }
 0x43a   :  { %1400 = vmax.xlane.f32.xlu2 %v1399_v43 }
 0x43d   :  { %v1000_v17 = vpop.f32.mrf.mxu1 }
 0x43e   :  { %v2760_v61 = vadd.f32 %v2027_v2, %v1000_v17 }
 0x440   :  { %v1024_v24 = vsel %vm308_vm3, %v2760_v61, -inf }
 0x445   :  { %v1003_v63 = vpop.f32.mrf.mxu1 }
 0x446   :  { %v2746_v39 = vadd.f32 %v2025_v38, %v1003_v63 }
 0x448   :  { %v1027_v47 = vsel %vm308_vm3, %v2746_v39, -inf }
 0x44d   :  { %v1006_v53 = vpop.f32.mrf.mxu1 }
 0x44e   :  { %v2732_v25 = vadd.f32 %v2023_v0, %v1006_v53 }
 0x450   :  { %v1030_v13 = vsel %vm308_vm3, %v2732_v25, -inf }
 0x455   :  { %v1009_v30 = vpop.f32.mrf.mxu1 }
 0x456   :  { %v2703_v21 = vadd.f32 %v2018_v48, %v1009_v30 }
 0x458   :  { %v1033_v33 = vsel %vm308_vm3, %v2703_v21, -inf }
 0x459   :  { %1034 = vmax.xlane.f32.xlu1 %v1033_v33 }
 0x45d   :  { %v1012_v3 = vpop.f32.mrf.mxu1 }
 0x45e   :  { %v1013_v29 = vadd.f32 %v2020_v62, %v1012_v3 }
 0x460   :  { %v1036_v23 = vsel %vm308_vm3, %v1013_v29, -inf }
 0x465   :  { %v1015_v37 = vpop.f32.mrf.mxu1 }
 0x466   :  { %v1016_v40 = vadd.f32 %v2019_v1, %v1015_v37 }
 0x468   :  { %v1039_v27 = vsel %vm308_vm3, %v1016_v40, -inf }
 0x469   :  { %1040 = vmax.xlane.f32.xlu0 %v1039_v27 }
 0x471   :  { %1037 = vmax.xlane.f32.xlu0 %v1036_v23 }
 0x479   :  { %1397 = vmax.xlane.f32.xlu0 %v1396_v31 }
 0x481   :  { %1394 = vmax.xlane.f32.xlu0 %v1393_v49 }
 0x489   :  { %1031 = vmax.xlane.f32.xlu0 %v1030_v13 }
 0x491   :  { %1391 = vmax.xlane.f32.xlu0 %v1390_v54 }
 0x499   :  { %1028 = vmax.xlane.f32.xlu0 %v1027_v47 }
 0x4a1   :  { %1388 = vmax.xlane.f32.xlu0 %v1387_v12 }
 0x4a9   :  { %1025 = vmax.xlane.f32.xlu0 %v1024_v24 }
 0x4ad   :  { %v1401_v35 = vpop.xlane.xlu2 %1400 }
 0x4b1   :  { %1385 = vmax.xlane.f32.xlu0 %v1384_v26 }
 0x4b9   :  { %1022 = vmax.xlane.f32.xlu0 %v1021_v20 }
 0x4c1   :  { %1382 = vmax.xlane.f32.xlu0 %v1381_v22 }
 0x4c9   :  { %1019 = vmax.xlane.f32.xlu0 %v1018_v8 }
 0x4cc   :  { %v1035_v52 = vpop.xlane.xlu1 %1034 }
 0x4cd   :  { %v1047_v48 = vsub.f32 %v2703_v21, %v1035_v52 }
 0x4cf   :  { %v1060_v3 = vmul.f32 1.442695, %v1047_v48 }
 0x4d1   :  { %1379 = vmax.xlane.f32.xlu0 %v1378_v41 }
 0x4dc   :  { %v1041_v44 = vpop.xlane.xlu0 %1040 }
 0x4dd   :  { %v1049_v43 = vsub.f32 %v1016_v40, %v1041_v44 }
 0x4df   :  { %v1064_v17 = vmul.f32 1.442695, %v1049_v43 }
 0x4e1   :  { %1954 = vpow2.f32 %v1064_v17 }
 0x4e4   :  { %v1038_v63 = vpop.xlane.xlu0 %1037 }
 0x4e5   :  { %v1048_v53 = vsub.f32 %v1013_v29, %v1038_v63 }
 0x4e7   :  { %v2802_v30 = vpop.eup %1954  ;;  %v1062_v33 = vmul.f32 1.442695, %v1048_v53 }
 0x4e8   :  { %v1087_v14 = vsel %vm308_vm3, %v2802_v30, 0.0 }
 0x4e9   :  { %1956 = vpow2.f32 %v1062_v33  ;;  %1088 = vadd.xlane.f32.xlu0 %v1087_v14 }
 0x4ea   :  { %1958 = vpow2.f32 %v1060_v3 }
 0x4ec   :  { %v1398_v37 = vpop.xlane.xlu0 %1397 }
 0x4ed   :  { %v1408_v26 = vsub.f32 %v2718_v36, %v1398_v37  ;;  %v1409_v36 = vsub.f32 %v2696_v55, %v1401_v35 }
 0x4ef   :  { %v2807_v1 = vpop.eup %1956  ;;  %v1422_v20 = vmul.f32 1.442695, %v1408_v26  ;;  %v1424_v43 = vmul.f32 1.442695, %v1409_v36 }
 0x4f0   :  { %v1084_v40 = vsel %vm308_vm3, %v2807_v1, 0.0  ;;  %v2811_v62 = vpop.eup %1958 }
 0x4f1   :  { %1085 = vadd.xlane.f32.xlu0 %v1084_v40  ;;  %v1081_v21 = vsel %vm308_vm3, %v2811_v62, 0.0 }
 0x4f4   :  { %v1395_v27 = vpop.xlane.xlu0 %1394 }
 0x4f9   :  { %1082 = vadd.xlane.f32.xlu0 %v1081_v21 }
 0x4fc   :  { %v1032_v29 = vpop.xlane.xlu0 %1031 }
 0x4fd   :  { %v1046_v23 = vsub.f32 %v2732_v25, %v1032_v29  ;;  %v1407_v25 = vsub.f32 %v2725_v5, %v1395_v27 }
 0x4ff   :  { %v1058_v34 = vmul.f32 1.442695, %v1046_v23  ;;  %v1420_v2 = vmul.f32 1.442695, %v1407_v25 }
 0x501   :  { %1960 = vpow2.f32 %v1058_v34 }
 0x504   :  { %v1392_v31 = vpop.xlane.xlu0 %1391 }
 0x505   :  { %v1406_v16 = vsub.f32 %v2739_v6, %v1392_v31 }
 0x507   :  { %v2816_v45 = vpop.eup %1960  ;;  %v1418_v22 = vmul.f32 1.442695, %v1406_v16 }
 0x508   :  { %v1078_v49 = vsel %vm308_vm3, %v2816_v45, 0.0 }
 0x509   :  { %1079 = vadd.xlane.f32.xlu0 %v1078_v49 }
 0x50c   :  { %v1029_v0 = vpop.xlane.xlu0 %1028 }
 0x50d   :  { %v1045_v13 = vsub.f32 %v2746_v39, %v1029_v0 }
 0x50f   :  { %v1056_v60 = vmul.f32 1.442695, %v1045_v13 }
 0x511   :  { %1962 = vpow2.f32 %v1056_v60 }
 0x514   :  { %v1389_v54 = vpop.xlane.xlu0 %1388 }
 0x515   :  { %v1405_v38 = vsub.f32 %v2753_v50, %v1389_v54 }
 0x517   :  { %v2822_v47 = vpop.eup %1962  ;;  %v1416_v19 = vmul.f32 1.442695, %v1405_v38 }
 0x518   :  { %v1075_v12 = vsel %vm308_vm3, %v2822_v47, 0.0 }
 0x519   :  { %1964 = vpow2.f32 %v1416_v19  ;;  %1076 = vadd.xlane.f32.xlu1 %v1075_v12 }
 0x51a   :  { %1966 = vpow2.f32 %v1420_v2 }
 0x51c   :  { %v1026_v24 = vpop.xlane.xlu0 %1025 }
 0x51d   :  { %v1044_v58 = vsub.f32 %v2760_v61, %v1026_v24 }
 0x51f   :  { %v2828_v39 = vpop.eup %1964  ;;  %v1054_v50 = vmul.f32 1.442695, %v1044_v58 }
 0x520   :  { %v1435_v5 = vsel %vm308_vm3, %v2828_v39, 0.0  ;;  %v2834_v8 = vpop.eup %1966 }
 0x521   :  { %1968 = vpow2.f32 %v1054_v50  ;;  %1436 = vadd.xlane.f32.xlu0 %v1435_v5  ;;  %v1441_v6 = vsel %vm308_vm3, %v2834_v8, 0.0 }
 0x522   :  { %1970 = vpow2.f32 %v1422_v20 }
 0x523   :  { %1972 = vpow2.f32 %v1418_v22 }
 0x524   :  { %v1386_v4 = vpop.xlane.xlu0 %1385 }
 0x525   :  { %v1404_v61 = vsub.f32 %v2767_v9, %v1386_v4 }
 0x527   :  { %v2837_v18 = vpop.eup %1968  ;;  %v1414_v41 = vmul.f32 1.442695, %v1404_v61 }
 0x528   :  { %v1072_v44 = vsel %vm308_vm3, %v2837_v18, 0.0  ;;  %v2844_v52 = vpop.eup %1970 }
 0x529   :  { %1974 = vpow2.f32 %v1414_v41  ;;  %1442 = vadd.xlane.f32.xlu0 %v1441_v6  ;;  %1073 = vadd.xlane.f32.xlu2 %v1072_v44  ;;  %v2846_v9 = vpop.eup %1972  ;;  %v1444_v53 = vsel %vm308_vm3, %v2844_v52, 0.0  ;;  %v1651_v6 = vld [vmem:[%s3132_s4] sm:$0xff] }
 0x52a   :  { %1976 = vpow2.f32 %v1424_v43  ;;  %v1438_v33 = vsel %vm308_vm3, %v2846_v9, 0.0 }
 0x52c   :  { %v1023_v17 = vpop.xlane.xlu0 %1022 }
 0x52d   :  { %v1043_v55 = vsub.f32 %v2774_v15, %v1023_v17 }
 0x52f   :  { %v2848_v63 = vpop.eup %1974  ;;  %v1052_v14 = vmul.f32 1.442695, %v1043_v55 }
 0x530   :  { %v1432_v48 = vsel %vm308_vm3, %v2848_v63, 0.0  ;;  %v2857_v37 = vpop.eup %1976 }
 0x531   :  { %1445 = vadd.xlane.f32.xlu0 %v1444_v53  ;;  %1433 = vadd.xlane.f32.xlu1 %v1432_v48  ;;  %1978 = vpow2.f32 %v1052_v14  ;;  %v1447_v27 = vsel %vm308_vm3, %v2857_v37, 0.0 }
 0x532   :  { %1439 = vadd.xlane.f32.xlu2 %v1438_v33 }
 0x534   :  { %v1383_v3 = vpop.xlane.xlu0 %1382 }
 0x535   :  { %v1403_v40 = vsub.f32 %v2782_v56, %v1383_v3 }
 0x537   :  { %v1412_v15 = vmul.f32 1.442695, %v1403_v40  ;;  %v2862_v29 = vpop.eup %1978  ;;  %v1654_v40 = vld [vmem:[%s3132_s4 + $0x18] sm:$0xff] }
 0x538   :  { %v1069_v56 = vsel %vm308_vm3, %v2862_v29, 0.0 }
 0x539   :  { %1980 = vpow2.f32 %v1412_v15  ;;  %1448 = vadd.xlane.f32.xlu0 %v1447_v27 }
 0x53c   :  { %v1020_v21 = vpop.xlane.xlu0 %1019 }
 0x53d   :  { %v1042_v23 = vsub.f32 %v2790_v10, %v1020_v21 }
 0x53f   :  { %v2865_v34 = vpop.eup %1980  ;;  %v1050_v31 = vmul.f32 1.442695, %v1042_v23 }
 0x540   :  { %v1429_v49 = vsel %vm308_vm3, %v2865_v34, 0.0 }
 0x541   :  { %1982 = vpow2.f32 %v1050_v31  ;;  %1430 = vadd.xlane.f32.xlu2 %v1429_v49  ;;  %1070 = vadd.xlane.f32.xlu0 %v1069_v56 }
 0x544   :  { %v1380_v0 = vpop.xlane.xlu0 %1379 }
 0x545   :  { %v1402_v13 = vsub.f32 %v2798_v32, %v1380_v0 }
 0x547   :  { %v2872_v60 = vpop.eup %1982  ;;  %v1410_v54 = vmul.f32 1.442695, %v1402_v13 }
 0x548   :  { %v1066_v10 = vsel %vm308_vm3, %v2872_v60, 0.0 }
 0x549   :  { %1984 = vpow2.f32 %v1410_v54  ;;  %1067 = vadd.xlane.f32.xlu1 %v1066_v10 }
 0x54f   :  { %v2876_v38 = vpop.eup %1984 }
 0x550   :  { %v1426_v25 = vsel %vm308_vm3, %v2876_v38, 0.0 }
 0x551   :  { %1427 = vadd.xlane.f32.xlu0 %v1426_v25 }
 0x559   :  { %1210 = vrot.lane.b32.xlu2 %v2551_v11, %s2060_s23 }
 0x55c   :  { %v1089_v19 = vpop.xlane.xlu0 %1088 }
 0x55d   :  { %1986 = vrcp.f32 %v1089_v19  ;;  %v1206_v58 = vand.u32 2147483648, %v1089_v19  ;;  %v1204_v50 = vand.u32 2147483647, %v1089_v19  ;;  %vm1200_vm12 = vweird.f32 %v1089_v19 }
 0x55f   :  { %v1207_v5 = vor.u32 1.1754944e-38, %v1206_v58  ;;  %vm1205_vm14 = vcmp.eq.f32.partialorder %v1204_v50, 8.507059e+37 }
 0x562   :  { %1570 = vrot.lane.b32.xlu1 %v2657_v42, %s2060_s23 }
 0x563   :  { %v1987_v32 = vpop.eup %1986 }
 0x564   :  { %v1196_v12 = vmul.f32 %v1987_v32, %v1089_v19  ;;  %v1086_v2 = vpop.xlane.xlu0 %1085  ;;  %vm1201_vm2 = vweird.f32 %v1987_v32 }
 0x565   :  { %1988 = vrcp.f32 %v1086_v2  ;;  %1212 = vrot.lane.b32.xlu0 %v2556_v59, %s2060_s23  ;;  %vm1202_vm13 = vmor %vm1200_vm12, %vm1201_vm2  ;;  %v1191_v61 = vand.u32 2147483648, %v1086_v2  ;;  %v1189_v41 = vand.u32 2147483647, %v1086_v2  ;;  %vm1185_vm0 = vweird.f32 %v1086_v2 }
 0x566   :  { %v1197_v24 = vsub.f32 1.0, %v1196_v12 }
 0x567   :  { %v1192_v17 = vor.u32 1.1754944e-38, %v1191_v61  ;;  %vm1190_vm4 = vcmp.eq.f32.partialorder %v1189_v41, 8.507059e+37 }
 0x568   :  { %v1198_v26 = vmul.f32 %v1987_v32, %v1197_v24 }
 0x56a   :  { %v1199_v16 = vadd.f32 %v1987_v32, %v1198_v26 }
 0x56b   :  { %v1989_v11 = vpop.eup %1988 }
 0x56c   :  { %v1181_v20 = vmul.f32 %v1989_v11, %v1086_v2  ;;  %v1083_v35 = vpop.xlane.xlu0 %1082  ;;  %v1203_v42 = vsel %vm1202_vm13, %v1987_v32, %v1199_v16  ;;  %vm1186_vm15 = vweird.f32 %v1989_v11 }
 0x56d   :  { %1990 = vrcp.f32 %v1083_v35  ;;  %1572 = vrot.lane.b32.xlu0 %v2661_v46, %s2060_s23  ;;  %v1208_v22 = vsel %vm1205_vm14, %v1207_v5, %v1203_v42  ;;  %vm1187_vm1 = vmor %vm1185_vm0, %vm1186_vm15  ;;  %v1176_v33 = vand.u32 2147483648, %v1083_v35  ;;  %v1174_v3 = vand.u32 2147483647, %v1083_v35 }
 0x56e   :  { %v1182_v59 = vsub.f32 1.0, %v1181_v20  ;;  %v1209_v4 = vmul.f32 %v2802_v30, %v1208_v22  ;;  %vm1170_vm6 = vweird.f32 %v1083_v35 }
 0x56f   :  { %v1177_v27 = vor.u32 1.1754944e-38, %v1176_v33  ;;  %vm1175_vm8 = vcmp.eq.f32.partialorder %v1174_v3, 8.507059e+37 }
 0x570   :  { %v1183_v36 = vmul.f32 %v1989_v11, %v1182_v59  ;;  %1815 = vmatpush.xpose.msk.msrb.mxu3 %vm308_vm3, %v1209_v4 }
 0x572   :  { %v1184_v44 = vadd.f32 %v1989_v11, %v1183_v36 }
 0x573   :  { %v1991_v43 = vpop.eup %1990 }
 0x574   :  { %v1166_v46 = vmul.f32 %v1991_v43, %v1083_v35  ;;  %v1188_v55 = vsel %vm1187_vm1, %v1989_v11, %v1184_v44  ;;  %vm1171_vm5 = vweird.f32 %v1991_v43 }
 0x575   :  { %1657 = vperm.xlu0 %1867, %v1651_v6   ;;  %v1193_v30 = vsel %vm1190_vm4, %v1192_v17, %v1188_v55  ;;  %vm1172_vm7 = vmor %vm1170_vm6, %vm1171_vm5 }
 0x576   :  { %v1167_v53 = vsub.f32 1.0, %v1166_v46  ;;  %v1194_v48 = vmul.f32 %v2807_v1, %v1193_v30 }
 0x578   :  { %v1168_v14 = vmul.f32 %v1991_v43, %v1167_v53  ;;  %1816 = vmatpush.xpose.msk.msrb.mxu3 %vm308_vm3, %v1194_v48 }
 0x57a   :  { %v1169_v15 = vadd.f32 %v1991_v43, %v1168_v14 }
 0x57c   :  { %v1080_v21 = vpop.xlane.xlu0 %1079  ;;  %v1173_v23 = vsel %vm1172_vm7, %v1991_v43, %v1169_v15 }
 0x57d   :  { %1992 = vrcp.f32 %v1080_v21  ;;  %1672 = vperm.xlu0 %1867, %v1654_v40   ;;  %v1178_v1 = vsel %vm1175_vm8, %v1177_v27, %v1173_v23  ;;  %v1161_v13 = vand.u32 2147483648, %v1080_v21  ;;  %v1159_v10 = vand.u32 2147483647, %v1080_v21 }
 0x57e   :  { %v1179_v31 = vmul.f32 %v2811_v62, %v1178_v1  ;;  %vm1155_vm10 = vweird.f32 %v1080_v21 }
 0x57f   :  { %v1162_v19 = vor.u32 1.1754944e-38, %v1161_v13  ;;  %vm1160_vm2 = vcmp.eq.f32.partialorder %v1159_v10, 8.507059e+37 }
 0x580   :  { %1817 = vmatpush.xpose.msk.msrb.mxu3 %vm308_vm3, %v1179_v31 }
 0x583   :  { %v1993_v49 = vpop.eup %1992 }
 0x584   :  { %v1151_v56 = vmul.f32 %v1993_v49, %v1080_v21  ;;  %vm1156_vm9 = vweird.f32 %v1993_v49 }
 0x585   :  { %vm1157_vm11 = vmor %vm1155_vm10, %vm1156_vm9 }
 0x586   :  { %v1152_v0 = vsub.f32 1.0, %v1151_v56 }
 0x588   :  { %v1153_v54 = vmul.f32 %v1993_v49, %v1152_v0 }
 0x58a   :  { %v1154_v25 = vadd.f32 %v1993_v49, %v1153_v54 }
 0x58c   :  { %v1077_v32 = vpop.xlane.xlu1 %1076  ;;  %v1158_v12 = vsel %vm1157_vm11, %v1993_v49, %v1154_v25 }
 0x58d   :  { %1994 = vrcp.f32 %v1077_v32  ;;  %v1163_v2 = vsel %vm1160_vm2, %v1162_v19, %v1158_v12  ;;  %v1146_v11 = vand.u32 2147483648, %v1077_v32  ;;  %v1144_v5 = vand.u32 2147483647, %v1077_v32 }
 0x58e   :  { %v1164_v62 = vmul.f32 %v2816_v45, %v1163_v2  ;;  %vm1140_vm13 = vweird.f32 %v1077_v32 }
 0x58f   :  { %v1147_v35 = vor.u32 1.1754944e-38, %v1146_v11  ;;  %vm1145_vm15 = vcmp.eq.f32.partialorder %v1144_v5, 8.507059e+37 }
 0x590   :  { %1818 = vmatpush.xpose.msk.msrb.mxu3 %vm308_vm3, %v1164_v62 }
 0x593   :  { %v1995_v24 = vpop.eup %1994 }
 0x594   :  { %v1136_v58 = vmul.f32 %v1995_v24, %v1077_v32  ;;  %v2902_v26 = vpop.xlane.xlu0 %1436  ;;  %vm1141_vm12 = vweird.f32 %v1995_v24 }
 0x595   :  { %vm1142_vm14 = vmor %vm1140_vm13, %vm1141_vm12  ;;  %v1506_v32 = vand.u32 2147483648, %v2902_v26 }
 0x596   :  { %v1137_v50 = vsub.f32 1.0, %v1136_v58 }
 0x598   :  { %v1138_v16 = vmul.f32 %v1995_v24, %v1137_v50 }
 0x59a   :  { %v1139_v20 = vadd.f32 %v1995_v24, %v1138_v16 }
 0x59c   :  { %v2904_v42 = vpop.xlane.xlu0 %1442  ;;  %v1074_v22 = vpop.xlane.xlu2 %1073  ;;  %v1143_v59 = vsel %vm1142_vm14, %v1995_v24, %v1139_v20 }
 0x59d   :  { %1996 = vrcp.f32 %v1074_v22  ;;  %v1148_v45 = vsel %vm1145_vm15, %v1147_v35, %v1143_v59  ;;  %v1131_v43 = vand.u32 2147483648, %v1074_v22  ;;  %v1129_v46 = vand.u32 2147483647, %v1074_v22 }
 0x59e   :  { %v1149_v4 = vmul.f32 %v2822_v47, %v1148_v45  ;;  %1998 = vrcp.f32 %v2904_v42  ;;  %vm1125_vm1 = vweird.f32 %v1074_v22  ;;  %v1536_v0 = vand.u32 2147483648, %v2904_v42 }
 0x59f   :  { %v1132_v48 = vor.u32 1.1754944e-38, %v1131_v43  ;;  %vm1130_vm5 = vcmp.eq.f32.partialorder %v1129_v46, 8.507059e+37  ;;  %vm1530_vm6 = vweird.f32 %v2904_v42  ;;  %v1534_v24 = vand.u32 2147483647, %v2904_v42 }
 0x5a0   :  { %1819 = vmatpush.xpose.msk.msrb.mxu3 %vm308_vm3, %v1149_v4  ;;  %v2947_v62 = vor.u32 1.1754944e-38, %v1536_v0 }
 0x5a1   :  { %vm2966_vm12 = vcmp.eq.f32.partialorder %v1534_v24, 8.507059e+37 }
 0x5a3   :  { %v1997_v61 = vpop.eup %1996 }
 0x5a4   :  { %v2908_v36 = vpop.xlane.xlu0 %1445  ;;  %v1121_v41 = vmul.f32 %v1997_v61, %v1074_v22  ;;  %vm1126_vm0 = vweird.f32 %v1997_v61  ;;  %v2915_v47 = vpop.eup %1998 }
 0x5a5   :  { %2000 = vrcp.f32 %v2908_v36  ;;  %v2913_v17 = vpop.xlane.xlu2 %1439  ;;  %vm1127_vm4 = vmor %vm1125_vm1, %vm1126_vm0  ;;  %v1526_v40 = vmul.f32 %v2915_v47, %v2904_v42  ;;  %v2926_v15 = vpop.xlane.xlu1 %1433  ;;  %v1551_v22 = vand.u32 2147483648, %v2908_v36  ;;  %vm1545_vm10 = vweird.f32 %v2908_v36 }
 0x5a6   :  { %v1122_v6 = vsub.f32 1.0, %v1121_v41  ;;  %2002 = vrcp.f32 %v2902_v26  ;;  %v1549_v41 = vand.u32 2147483647, %v2908_v36  ;;  %vm1531_vm2 = vweird.f32 %v2915_v47 }
 0x5a7   :  { %2004 = vrcp.f32 %v2913_v17  ;;  %v1527_v56 = vsub.f32 1.0, %v1526_v40  ;;  %v1552_v40 = vor.u32 1.1754944e-38, %v1551_v22  ;;  %vm1500_vm0 = vweird.f32 %v2902_v26 }
 0x5a8   :  { %v1123_v44 = vmul.f32 %v1997_v61, %v1122_v6  ;;  %vm1550_vm1 = vcmp.eq.f32.partialorder %v1549_v41, 8.507059e+37  ;;  %v1521_v42 = vand.u32 2147483648, %v2913_v17 }
 0x5a9   :  { %v1528_v2 = vmul.f32 %v2915_v47, %v1527_v56 }
 0x5aa   :  { %v1124_v55 = vadd.f32 %v1997_v61, %v1123_v44 }
 0x5ab   :  { %v2917_v30 = vpop.eup %2000 }
 0x5ac   :  { %v1449_v53 = vpop.xlane.xlu0 %1448  ;;  %v1541_v33 = vmul.f32 %v2917_v30, %v2908_v36  ;;  %v1128_v14 = vsel %vm1127_vm4, %v1997_v61, %v1124_v55  ;;  %v2922_v3 = vpop.eup %2002  ;;  %vm1546_vm8 = vweird.f32 %v2917_v30  ;;  %v1529_v36 = vadd.f32 %v2915_v47, %v1528_v2 }
 0x5ad   :  { %2006 = vrcp.f32 %v1449_v53  ;;  %v1133_v27 = vsel %vm1130_vm5, %v1132_v48, %v1128_v14  ;;  %v2929_v1 = vpop.eup %2004  ;;  %v1496_v31 = vmul.f32 %v2922_v3, %v2902_v26  ;;  %v1566_v16 = vand.u32 2147483648, %v1449_v53  ;;  %vm2977_vm13 = vmor %vm1545_vm10, %vm1546_vm8 }
 0x5ae   :  { %v1134_v21 = vmul.f32 %v2837_v18, %v1133_v27  ;;  %v1542_v23 = vsub.f32 1.0, %v1541_v33  ;;  %2008 = vrcp.f32 %v2926_v15  ;;  %v1511_v18 = vmul.f32 %v2929_v1, %v2913_v17  ;;  %vm3001_vm5 = vmor %vm1530_vm6, %vm1531_vm2 }
 0x5af   :  { %v1497_v19 = vsub.f32 1.0, %v1496_v31  ;;  %v1564_v5 = vand.u32 2147483647, %v1449_v53  ;;  %vm1560_vm9 = vweird.f32 %v1449_v53  ;;  %v1567_v44 = vor.u32 1.1754944e-38, %v1566_v16 }
 0x5b0   :  { %1820 = vmatpush.xpose.msk.msrb.mxu3 %vm308_vm3, %v1134_v21  ;;  %v1543_v10 = vmul.f32 %v2917_v30, %v1542_v23  ;;  %v1512_v11 = vsub.f32 1.0, %v1511_v18  ;;  %vm1501_vm15 = vweird.f32 %v2922_v3  ;;  %vm1515_vm8 = vweird.f32 %v2913_v17 }
 0x5b1   :  { %v1498_v35 = vmul.f32 %v2922_v3, %v1497_v19  ;;  %vm1565_vm14 = vcmp.eq.f32.partialorder %v1564_v5, 8.507059e+37  ;;  %v1507_v61 = vor.u32 1.1754944e-38, %v1506_v32 }
 0x5b2   :  { %v1544_v20 = vadd.f32 %v2917_v30, %v1543_v10  ;;  %v1513_v48 = vmul.f32 %v2929_v1, %v1512_v11 }
 0x5b3   :  { %v2007_v49 = vpop.eup %2006  ;;  %v2991_v23 = vadd.f32 %v2922_v3, %v1498_v35 }
 0x5b4   :  { %v1556_v13 = vmul.f32 %v2007_v49, %v1449_v53  ;;  %v2936_v54 = vpop.xlane.xlu0 %1070  ;;  %v2942_v25 = vpop.xlane.xlu2 %1430  ;;  %vm1561_vm7 = vweird.f32 %v2007_v49  ;;  %v1548_v33 = vsel %vm2977_vm13, %v2917_v30, %v1544_v20  ;;  %v1514_v19 = vadd.f32 %v2929_v1, %v1513_v48  ;;  %vm3051_vm13 = vmor %vm1500_vm0, %vm1501_vm15 }
 0x5b5   :  { %2010 = vrcp.f32 %v2936_v54  ;;  %v2950_v58 = vpop.eup %2008  ;;  %vm2960_vm11 = vmor %vm1560_vm9, %vm1561_vm7  ;;  %v1553_v30 = vsel %vm1550_vm1, %v1552_v40, %v1548_v33  ;;  %vm1516_vm7 = vweird.f32 %v2929_v1  ;;  %vm1110_vm6 = vweird.f32 %v2936_v54 }
 0x5b6   :  { %v1557_v12 = vsub.f32 1.0, %v1556_v13  ;;  %2012 = vrcp.f32 %v2942_v25  ;;  %v1481_v4 = vmul.f32 %v2950_v58, %v2926_v15  ;;  %v1114_v13 = vand.u32 2147483647, %v2936_v54 }
 0x5b7   :  { %v1554_v16 = vmul.f32 %v2844_v52, %v1553_v30  ;;  %v1491_v53 = vand.u32 2147483648, %v2926_v15  ;;  %vm1485_vm1 = vweird.f32 %v2926_v15 }
 0x5b8   :  { %v1558_v50 = vmul.f32 %v2007_v49, %v1557_v12  ;;  %v1482_v31 = vsub.f32 1.0, %v1481_v4  ;;  %vm1115_vm10 = vcmp.eq.f32.partialorder %v1114_v13, 8.507059e+37  ;;  %v1474_v13 = vand.u32 2147483647, %v2942_v25 }
 0x5ba   :  { %v1559_v59 = vadd.f32 %v2007_v49, %v1558_v50  ;;  %v1483_v24 = vmul.f32 %v2950_v58, %v1482_v31  ;;  %v1492_v31 = vor.u32 1.1754944e-38, %v1491_v53 }
 0x5bb   :  { %v2011_v45 = vpop.eup %2010 }
 0x5bc   :  { %v1106_v43 = vmul.f32 %v2011_v45, %v2936_v54  ;;  %v2971_v46 = vpop.xlane.xlu1 %1067  ;;  %v1563_v55 = vsel %vm2960_vm11, %v2007_v49, %v1559_v59  ;;  %v2988_v14 = vpop.eup %2012  ;;  %v1116_v49 = vand.u32 2147483648, %v2936_v54  ;;  %vm1111_vm4 = vweird.f32 %v2011_v45  ;;  %vm3030_vm11 = vmor %vm1515_vm8, %vm1516_vm7 }
 0x5bd   :  { %2014 = vrcp.f32 %v2971_v46  ;;  %v1568_v21 = vsel %vm1565_vm14, %v1567_v44, %v1563_v55  ;;  %v1466_v18 = vmul.f32 %v2988_v14, %v2942_v25  ;;  %vm1112_vm9 = vmor %vm1110_vm6, %vm1111_vm4  ;;  %v1518_v59 = vsel %vm3030_vm11, %v2929_v1, %v1514_v19  ;;  %v1211_v19 = vpop.permute.xlu2 %1210 }
 0x5be   :  { %v1107_v27 = vsub.f32 1.0, %v1106_v43  ;;  %v1569_v56 = vmul.f32 %v2857_v37, %v1568_v21  ;;  %v1533_v37 = vsel %vm3001_vm5, %v2915_v47, %v1529_v36  ;;  %v1117_v50 = vor.u32 1.1754944e-38, %v1116_v49 }
 0x5bf   :  { %v1519_v47 = vand.u32 2147483647, %v2913_v17  ;;  %v1538_v54 = vsel %vm2966_vm12, %v2947_v62, %v1533_v37  ;;  %v1467_v35 = vsub.f32 1.0, %v1466_v18  ;;  %v1504_v17 = vand.u32 2147483647, %v2902_v26 }
 0x5c0   :  { %v1108_v0 = vmul.f32 %v2011_v45, %v1107_v27  ;;  %1833 = vmatpush.xpose.msk.msrb.mxu0 %vm308_vm3, %v1569_v56  ;;  %v1101_v41 = vand.u32 2147483648, %v2971_v46  ;;  %v1539_v6 = vmul.f32 %v2834_v8, %v1538_v54  ;;  %v1099_v1 = vand.u32 2147483647, %v2971_v46 }
 0x5c1   :  { %vm1520_vm2 = vcmp.eq.f32.partialorder %v1519_v47, 8.507059e+37  ;;  %v1468_v32 = vmul.f32 %v2988_v14, %v1467_v35  ;;  %v1503_v8 = vsel %vm3051_vm13, %v2922_v3, %v2991_v23  ;;  %v1484_v55 = vadd.f32 %v2950_v58, %v1483_v24 }
 0x5c2   :  { %v1109_v12 = vadd.f32 %v2011_v45, %v1108_v0  ;;  %vm1486_vm14 = vweird.f32 %v2950_v58  ;;  %vm1095_vm15 = vweird.f32 %v2971_v46  ;;  %vm1505_vm0 = vcmp.eq.f32.partialorder %v1504_v17, 8.507059e+37 }
 0x5c3   :  { %v2015_v2 = vpop.eup %2014  ;;  %v1102_v48 = vor.u32 1.1754944e-38, %v1101_v41  ;;  %v1489_v3 = vand.u32 2147483647, %v2926_v15  ;;  %vm1100_vm5 = vcmp.eq.f32.partialorder %v1099_v1, 8.507059e+37  ;;  %v1508_v21 = vsel %vm1505_vm0, %v1507_v61, %v1503_v8  ;;  %vm3072_vm7 = vmor %vm1485_vm1, %vm1486_vm14 }
 0x5c4   :  { %v1091_v11 = vmul.f32 %v2015_v2, %v2971_v46  ;;  %v3021_v5 = vpop.xlane.xlu0 %1427  ;;  %v1113_v20 = vsel %vm1112_vm9, %v2011_v45, %v1109_v12  ;;  %1834 = vmatpush.xpose.msk.msrb.mxu0 %vm308_vm3, %v1554_v16  ;;  %v1522_v45 = vor.u32 1.1754944e-38, %v1521_v42  ;;  %vm1096_vm12 = vweird.f32 %v2015_v2 }
 0x5c5   :  { %2016 = vrcp.f32 %v3021_v5  ;;  %v1118_v22 = vsel %vm1115_vm10, %v1117_v50, %v1113_v20  ;;  %vm1097_vm4 = vmor %vm1095_vm15, %vm1096_vm12  ;;  %v1469_v15 = vadd.f32 %v2988_v14, %v1468_v32  ;;  %vm1471_vm8 = vweird.f32 %v2988_v14  ;;  %v1859_v32 = vld [vmem:[%s3131_s3] sm:$0xff] }
 0x5c6   :  { %v1092_v62 = vsub.f32 1.0, %v1091_v11  ;;  %v1119_v4 = vmul.f32 %v2862_v29, %v1118_v22  ;;  %v1523_v43 = vsel %vm1520_vm2, %v1522_v45, %v1518_v59  ;;  %v1476_v49 = vand.u32 2147483648, %v2942_v25  ;;  %v1652_v22 = vld [vmem:[%s3132_s4 + $0x8] sm:$0xff] }
 0x5c7   :  { %v1524_v33 = vmul.f32 %v2846_v9, %v1523_v43  ;;  %v1488_v9 = vsel %vm3072_vm7, %v2950_v58, %v1484_v55  ;;  %vm1470_vm6 = vweird.f32 %v2942_v25  ;;  %v1509_v30 = vmul.f32 %v2828_v39, %v1508_v21 }
 0x5c8   :  { %v1093_v44 = vmul.f32 %v2015_v2, %v1092_v62  ;;  %1821 = vmatpush.xpose.msk.msrb.mxu3 %vm308_vm3, %v1119_v4  ;;  %1835 = vmatpush.xpose.msk.msrb.mxu0 %vm308_vm3, %v1539_v6  ;;  %vm1490_vm9 = vcmp.eq.f32.partialorder %v1489_v3, 8.507059e+37  ;;  %vm1472_vm10 = vmor %vm1470_vm6, %vm1471_vm8  ;;  %v1477_v37 = vor.u32 1.1754944e-38, %v1476_v49  ;;  %vm1455_vm2 = vweird.f32 %v3021_v5 }
 0x5c9   :  { %v1493_v58 = vsel %vm1490_vm9, %v1492_v31, %v1488_v9  ;;  %v1473_v18 = vsel %vm1472_vm10, %v2988_v14, %v1469_v15  ;;  %vm1475_vm12 = vcmp.eq.f32.partialorder %v1474_v13, 8.507059e+37  ;;  %v1459_v25 = vand.u32 2147483647, %v3021_v5 }
 0x5ca   :  { %v1094_v26 = vadd.f32 %v2015_v2, %v1093_v44  ;;  %v1494_v39 = vmul.f32 %v2848_v63, %v1493_v58  ;;  %v1478_v12 = vsel %vm1475_vm12, %v1477_v37, %v1473_v18  ;;  %vm1685_vm15 = vcmask 261120  }
 0x5cb   :  { %v2017_v36 = vpop.eup %2016  ;;  %v1479_v24 = vmul.f32 %v2865_v34, %v1478_v12  ;;  %vm1460_vm14 = vcmp.eq.f32.partialorder %v1459_v25, 8.507059e+37 }
 0x5cc   :  { %v1451_v40 = vmul.f32 %v2017_v36, %v3021_v5  ;;  %v1098_v27 = vsel %vm1097_vm4, %v2015_v2, %v1094_v26  ;;  %1836 = vmatpush.xpose.msk.msrb.mxu0 %vm308_vm3, %v1524_v33  ;;  %vm1456_vm11 = vweird.f32 %v2017_v36 }
 0x5cd   :  { %v1103_v23 = vsel %vm1100_vm5, %v1102_v48, %v1098_v27  ;;  %vm1457_vm13 = vmor %vm1455_vm2, %vm1456_vm11 }
 0x5ce   :  { %v1452_v56 = vsub.f32 1.0, %v1451_v40  ;;  %v1104_v0 = vmul.f32 %v2872_v60, %v1103_v23  ;;  %v1461_v60 = vand.u32 2147483648, %v3021_v5 }
 0x5d0   :  { %v1453_v10 = vmul.f32 %v2017_v36, %v1452_v56  ;;  %1822 = vmatpush.xpose.msk.msrb.mxu3 %vm308_vm3, %v1104_v0  ;;  %1837 = vmatpush.xpose.msk.msrb.mxu0 %vm308_vm3, %v1509_v30  ;;  %v1462_v2 = vor.u32 1.1754944e-38, %v1461_v60 }
 0x5d2   :  { %v1454_v42 = vadd.f32 %v2017_v36, %v1453_v10 }
 0x5d3   :  { %1823 = vmatmul.msk.f32.vlgmr.msrb.gmra.mxu3 %vm308_vm3, %v1211_v19 }
 0x5d4   :  { %1838 = vmatpush.xpose.msk.msrb.mxu0 %vm308_vm3, %v1494_v39  ;;  %v1458_v14 = vsel %vm1457_vm13, %v2017_v36, %v1454_v42  ;;  %v1571_v47 = vpop.permute.xlu1 %1570 }
 0x5d5   :  { %v1463_v50 = vsel %vm1460_vm14, %v1462_v2, %v1458_v14 }
 0x5d6   :  { %v1464_v63 = vmul.f32 %v2876_v38, %v1463_v50  ;;  %v1653_v38 = vld [vmem:[%s3132_s4 + $0x10] sm:$0xff] }
 0x5d7   :  { %v1213_v16 = vpop.permute.xlu0 %1212 }
 0x5d8   :  { %1839 = vmatpush.xpose.msk.msrb.mxu0 %vm308_vm3, %v1479_v24 }
 0x5db   :  { %1824 = vmatmul.msk.f32.gmra.mxu3 %vm308_vm3, %v1213_v16 }
 0x5dc   :  { %1840 = vmatpush.xpose.msk.msrb.mxu0 %vm308_vm3, %v1464_v63 }
 0x5df   :  { %1841 = vmatmul.msk.f32.vlgmr.msrb.gmra.mxu0 %vm308_vm3, %v1571_v47  ;;  %v1573_v11 = vpop.permute.xlu0 %1572 }
 0x5e7   :  { %1842 = vmatmul.msk.f32.gmra.mxu0 %vm308_vm3, %v1573_v11 }
 0x656   :  { %v1259_v5 = vpop.f32.mrf.mxu3 }
 0x65c   :  { %v1619_v20 = vpop.f32.mrf.mxu0 }
 0x65e   :  { %v1262_v34 = vpop.f32.mrf.mxu3 }
 0x65f   :  { %v1885_v54 = vpack.i.bf16 %v1262_v34, %v1259_v5 }
 0x661   :  { %1886 = vrot.lane.b32.xlu1 %v1885_v54, %s2060_s23 }
 0x664   :  { %v1622_v52 = vpop.f32.mrf.mxu0 }
 0x665   :  { %v1880_v35 = vpack.i.bf16 %v1622_v52, %v1619_v20 }
 0x667   :  { %1881 = vrot.lane.b32.xlu2 %v1880_v35, %s2060_s23 }
 0x669   :  { %1667 = vperm.xlu1 %1868, %v1653_v38  }
 0x66f   :  { %1662 = vperm.xlu2 %1869, %v1652_v22  }
 0x6c1   :  { %v1882_v59 = vpop.permute.xlu2 %1881 }
 0x6c2   :  { %v1884_v45 = vunpack.i.h.bf16 %v1882_v59  ;;  %v1883_v62 = vunpack.i.l.bf16 %v1882_v59 }
 0x6c4   :  { %v1644_v4 = vsel %vm308_vm3, %v2687_v28, %v1884_v45  ;;  %v1643_v17 = vsel %vm308_vm3, %v2685_v57, %v1883_v62  ;;  %v1860_v57 = vld [vmem:[%s3131_s3 + $0x8] sm:$0xff]  ;;  %v1658_v28 = vpop.permute.xlu0 %1657  ;;  %s2062_s3 = smov 128  }
 0x6c5   :  { %v1650_v61 = vpack.c.bf16 %v1644_v4, %v1643_v17 }
 0x6c7   :  { %1698 = vmatpush.bf16.msra.mxu3 %v1650_v61 }
 0x6cc   :  { %v1673_v33 = vpop.permute.xlu0 %1672 }
 0x6d3   :  { %v1887_v41 = vpop.permute.xlu1 %1886 }
 0x6d4   :  { %v1889_v6 = vunpack.i.h.bf16 %v1887_v41  ;;  %v1888_v44 = vunpack.i.l.bf16 %v1887_v41 }
 0x6d6   :  { %v1641_v43 = vsel %vm308_vm3, %v2679_v7, %v1888_v44  ;;  %v1642_v1 = vsel %vm308_vm3, %v2682_v51, %v1889_v6  ;;  %v1663_v7 = vpop.permute.xlu2 %1662 }
 0x6d7   :  { %v1649_v29 = vpack.c.bf16 %v1642_v1, %v1641_v43 }
 0x6d9   :  { %1699 = vmatpush.bf16.msra.mxu3 %v1649_v29 }
 0x6db   :  { %v1668_v26 = vpop.permute.xlu1 %1667 }
 0x6dc   :  { %1851 = vmatmul.msk.bf16.vlgmr.msra.gmra.mxu3 %vm1685_vm15, %v1859_v32 }
 0x6ec   :  { %1852 = vmatmul.msk.bf16.gmra.mxu3 %vm1685_vm15, %v1860_v57 }
 0x75f   :  { %v1701_v8 = vpop.f32.mrf.mxu3 }
 0x760   :  { %v1702_v55 = vadd.f32 %v1701_v8, %v1658_v28 }
 0x762   :  { %1711 = vst [vmem:[#allocation2] sm:$0xff] %v1702_v55 }
 0x767   :  { %v1703_v53 = vpop.f32.mrf.mxu3 }
 0x768   :  { %v1704_v51 = vadd.f32 %v1703_v53, %v1663_v7 }
 0x76a   :  { %1712 = vst [vmem:[#allocation2 + $0x8] sm:$0xff] %v1704_v51 }
 0x76f   :  { %v1706_v36 = vpop.f32.mrf.mxu3 }
 0x770   :  { %v1707_v48 = vadd.f32 %v1706_v36, %v1668_v26 }
 0x772   :  { %1713 = vst [vmem:[#allocation2 + $0x10] sm:$0xff] %v1707_v48 }
 0x777   :  { %v1708_v3 = vpop.f32.mrf.mxu3 }
 0x778   :  { %v1709_v40 = vadd.f32 %v1708_v3, %v1673_v33 }
 0x77a   :  { %1714 = vst [vmem:[#allocation2 + $0x18] sm:$0xff] %v1709_v40 }
 0x77b   :  { %1727 = dma.vmem_to_hbm [thread:$0]  %s1720_s29, 512, %s1722_s8, [#allocation3], %s2062_s3, %s2062_s3, %s2063_s9  }
 0x77c   :  { %2057 = dma.done.wait [#allocation3], 512  }
 0x77d   :  { %2058 = vsyncadd [#allocation3], 4294966784 }
 0x77e   :  { %1732 = vsyncpa [#allocation3], 1 }

</bundles_post_ra>
